<compile_context>
chip_gen: v7x
topology: tpu7x:2x2x1
jax: 0.10.0
libtpu: 0.0.40
codegen_flags: <defaults>
</compile_context>

<pallas_src>
import functools

import jax
import jax.numpy as jnp
from jax.experimental import pallas as pl
from jax.experimental.pallas import tpu as pltpu

_MIB = 1024 * 1024


def _patch_merger_kernel(x_ref, lnw_ref, lnb_ref, w1_ref, b1_ref, w2_ref, b2_ref,
                         o_ref, h_ref, acc_ref, *, context_dim, groups, eps,
                         approximate_gelu):
    k = pl.program_id(1)

    @pl.when(k == 0)
    def _layernorm():
        # LayerNorm over each original token (contiguous context_dim segment of
        # the row); computed once per row tile and cached in VMEM for all hidden
        # slabs.  Static per-group lane slices -> no full-tile relayout copies.
        lnw = lnw_ref[...].astype(jnp.float32)
        lnb = lnb_ref[...].astype(jnp.float32)
        for g in range(groups):
            lo = g * context_dim
            seg = x_ref[:, lo:lo + context_dim].astype(jnp.float32)
            mean = jnp.mean(seg, axis=-1, keepdims=True)
            cent = seg - mean
            var = jnp.mean(cent * cent, axis=-1, keepdims=True)
            xn = cent * jax.lax.rsqrt(var + eps) * lnw + lnb
            h_ref[:, lo:lo + context_dim] = xn.astype(h_ref.dtype)

    # h1 slab = LN(x) @ W1[:, slab] + b1[slab]   (MXU, f32 accumulation)
    h1 = jnp.dot(h_ref[...], w1_ref[...], preferred_element_type=jnp.float32)
    h1 = h1 + b1_ref[...].astype(jnp.float32)
    if approximate_gelu:
        # tanh GELU rides the (otherwise idle) EUP slot instead of a long VALU
        # erf polynomial.  Off by default to keep bit-parity with torch GELU.
        h1 = 0.5 * h1 * (1.0 + jnp.tanh(0.7978845608028654
                                        * (h1 + 0.044715 * h1 * h1 * h1)))
    else:
        # Exact GELU (torch nn.GELU default): 0.5 * x * (1 + erf(x / sqrt(2)))
        h1 = 0.5 * h1 * (1.0 + jax.lax.erf(h1 * 0.7071067811865476))

    contrib = jnp.dot(h1.astype(w2_ref.dtype), w2_ref[...],
                      preferred_element_type=jnp.float32)

    @pl.when(k == 0)
    def _init_acc():
        # Initialize with the first slab (+ b2 folded in): no zero-store pass.
        acc_ref[...] = contrib + b2_ref[...].astype(jnp.float32)

    @pl.when(k > 0)
    def _accumulate():
        acc_ref[...] += contrib

    @pl.when(k == pl.num_programs(1) - 1)
    def _finalize():
        o_ref[...] = acc_ref[...].astype(o_ref.dtype)


def _largest_aligned_divisor(n, align, upper):
    """Largest multiple of `align` that divides `n` and is <= upper, or None."""
    best = None
    d = align
    upper = min(upper, n)
    while d <= upper:
        if n % d == 0:
            best = d
        d += align
    return best


def _vmem_capacity_bytes():
    try:
        return int(pltpu.get_tpu_info().vmem_capacity_bytes)
    except Exception:
        return 64 * _MIB  # conservative fallback (v7x per-TC VMEM)


def prepare_params(params, compute_dtype=None):
    """One-time weight prep, OUTSIDE the hot path: transpose PyTorch (out,in)
    Linear weights to (in,out) and optionally cast to the matmul dtype
    (bf16 recommended in production; f32 kept here for exact comparison)."""
    ln_w, ln_b, w1, b1, w2, b2 = params
    wdt = jnp.dtype(compute_dtype) if compute_dtype is not None else w1.dtype
    return (ln_w.reshape(1, -1), ln_b.reshape(1, -1),
            jnp.asarray(w1.T, dtype=wdt), b1.reshape(1, -1),
            jnp.asarray(w2.T, dtype=wdt), b2.reshape(1, -1))


def patch_merger(x, prepared_params, *, spatial_merge_size=2, eps=1e-6,
                 tm=None, tn=512, approximate_gelu=False):
    """x: (B, S, C) -> (B, S // merge^2, C).  prepared_params from prepare_params()."""
    B, S, C = x.shape
    merge2 = spatial_merge_size ** 2
    H = C * merge2
    assert S % merge2 == 0, "sequence length must be divisible by merge^2"
    M = B * S // merge2

    ln_w2, ln_b2, w1_t, b1_2, w2_t, b2_2 = prepared_params
    assert w1_t.shape == (H, H) and w2_t.shape == (H, C)

    isx = jnp.dtype(x.dtype).itemsize
    isw = jnp.dtype(w1_t.dtype).itemsize
    ish = isw  # LN scratch kept in the matmul (weight) dtype

    vmem_cap = _vmem_capacity_bytes()
    vmem_budget = max(16 * _MIB, min(vmem_cap, 128 * _MIB) - 8 * _MIB)

    # --- tiling ------------------------------------------------------------
    pack = max(1, 4 // isx)           # sublane packing factor of the activations
    row_align = 8 * pack              # 8 rows for f32, 16 for bf16

    # Hidden-dim slab: largest 128-multiple divisor of H <= target, so the full
    # (H,H) W1 never has to be VMEM-resident (v7x-safe) for any H.
    tn_div = _largest_aligned_divisor(H, 128, min(tn, H))
    tn = tn_div if tn_div is not None else H   # only tiny / pathological H

    # Row tile: large enough that re-streaming W1/W2 per row tile is amortised
    # (weight-streaming intensity ~ 2*tm/itemsize flop/byte vs the MXU knee).
    if tm is None:
        tm = 512 if vmem_cap <= 96 * _MIB else 1024   # v7x : v5e/v6e
    tm = max(row_align, min(tm, pl.cdiv(M, row_align) * row_align))
    tm = (tm // row_align) * row_align
    # Prefer a tm dividing M (no ragged tail) when it costs < 2x in tile size.
    tm_div = _largest_aligned_divisor(M, row_align, tm)
    if tm_div is not None and 2 * tm_div >= tm:
        tm = tm_div
    # Megacore: ensure the "parallel" axis has >= 2 row tiles (v7x has 2 TCs).
    if pl.cdiv(M, tm) < 2 and M >= 2 * row_align:
        tm = max(row_align, pl.cdiv(pl.cdiv(M, 2), row_align) * row_align)

    def vmem_estimate(tm_, tn_):
        return (2 * tm_ * H * isx             # x row tile (double buffered)
                + 2 * (H * tn_ + tn_) * isw   # W1 slab + b1 slab
                + 2 * tn_ * C * isw           # W2 slab
                + 2 * tm_ * C * isx           # output tile
                + tm_ * H * ish               # LN scratch (matmul dtype)
                + tm_ * C * 4                 # f32 accumulator
                + 8 * C * isw)                # LN params + b2

    # Shrink tm (then tn) until the working set fits the per-core VMEM budget.
    while vmem_estimate(tm, tn) > vmem_budget and tm > row_align:
        tm = max(row_align, ((tm // 2) // row_align) * row_align)
    while vmem_estimate(tm, tn) > vmem_budget and tn > 128:
        smaller = _largest_aligned_divisor(H, 128, tn // 2)
        if smaller is None or smaller == tn:
            break
        tn = smaller

    nk = max(1, H // tn)
    num_row_tiles = pl.cdiv(M, tm)

    # No jnp.pad of the activation: a ragged last row tile reads don't-care rows
    # and Pallas masks the out-of-bounds part of the final store.
    x_flat = x.reshape(M, H)

    kernel = functools.partial(_patch_merger_kernel, context_dim=C, groups=merge2,
                               eps=eps, approximate_gelu=approximate_gelu)

    vmem_limit = int(min(vmem_budget, max(32 * _MIB, 2 * vmem_estimate(tm, tn))))

    cost = pl.CostEstimate(
        flops=int(2 * M * H * (H + C)),
        transcendentals=int(M * H),
        # Weights are re-streamed once per row tile (index_map resets over i).
        bytes_accessed=int(M * H * isx + M * C * isx
                           + num_row_tiles * (H * H + H * C + H) * isw
                           + 4 * C * isw),
    )

    out_flat = pl.pallas_call(
        kernel,
        out_shape=jax.ShapeDtypeStruct((M, C), x.dtype),
        grid_spec=pltpu.PrefetchScalarGridSpec(
            num_scalar_prefetch=0,
            grid=(num_row_tiles, nk),
            in_specs=[
                pl.BlockSpec((tm, H), lambda i, k: (i, 0)),   # x row tile (resident over k)
                pl.BlockSpec((1, C), lambda i, k: (0, 0)),    # LN weight
                pl.BlockSpec((1, C), lambda i, k: (0, 0)),    # LN bias
                pl.BlockSpec((H, tn), lambda i, k: (0, k)),   # W1^T column slab
                pl.BlockSpec((1, tn), lambda i, k: (0, k)),   # b1 slab
                pl.BlockSpec((tn, C), lambda i, k: (k, 0)),   # W2^T row slab
                pl.BlockSpec((1, C), lambda i, k: (0, 0)),    # b2
            ],
            out_specs=pl.BlockSpec((tm, C), lambda i, k: (i, 0)),
            scratch_shapes=[
                pltpu.VMEM((tm, H), w1_t.dtype),   # LN(x) cached across the k loop
                pltpu.VMEM((tm, C), jnp.float32),  # f32 accumulator for Linear2
            ],
        ),
        compiler_params=pltpu.CompilerParams(
            dimension_semantics=("parallel", "arbitrary"),
            vmem_limit_bytes=vmem_limit,
        ),
        cost_estimate=cost,
    )(x_flat, ln_w2, ln_b2, w1_t, b1_2, w2_t, b2_2)

    return out_flat.reshape(B, S // merge2, C)


def _init_params(key, context_dim, spatial_merge_size=2, dtype=jnp.float32):
    H = context_dim * spatial_merge_size ** 2
    k1, k2, k3, k4 = jax.random.split(key, 4)
    ln_w = jnp.ones((context_dim,), dtype)
    ln_b = jnp.zeros((context_dim,), dtype)
    # Deterministic small random weights (PyTorch Linear layout: (out, in)).
    w1 = jax.random.normal(k1, (H, H), dtype) * 0.02
    b1 = jax.random.normal(k2, (H,), dtype) * 0.02
    w2 = jax.random.normal(k3, (context_dim, H), dtype) * 0.02
    b2 = jax.random.normal(k4, (context_dim,), dtype) * 0.02
    return (ln_w, ln_b, w1, b1, w2, b2)


def _reference(x, params, eps=1e-6, spatial_merge_size=2):
    ln_w, ln_b, w1, b1, w2, b2 = params
    B, S, C = x.shape
    H = C * spatial_merge_size ** 2
    mean = jnp.mean(x, -1, keepdims=True)
    var = jnp.mean((x - mean) ** 2, -1, keepdims=True)
    xn = (x - mean) / jnp.sqrt(var + eps) * ln_w + ln_b
    xr = xn.reshape(B, -1, H)
    h = xr @ w1.T + b1
    h = 0.5 * h * (1.0 + jax.lax.erf(h / jnp.sqrt(2.0)))
    return h @ w2.T + b2


if __name__ == "__main__":
    key = jax.random.PRNGKey(0)
    kx, kp = jax.random.split(key)

    # Small but lane-aligned test shape: context_dim=128, merge=2 -> hidden_size=512.
    B, S, C = 2, 64, 128
    x = jax.random.normal(kx, (B, S, C), jnp.float32)
    params = _init_params(kp, C)

    # Weight transpose / layout prep happens ONCE, outside the hot path.
    prepared = prepare_params(params)

    # tn=256 exercises the 2-step hidden-slab reduction (accumulator path);
    # f32 demo for exact comparison (production would prepare bf16 weights).
    fn = jax.jit(functools.partial(patch_merger, tn=256))
    out = jax.block_until_ready(fn(x, prepared))

    ref = _reference(x, params)
    assert out.shape == (B, S // 4, C), out.shape
    max_err = float(jnp.max(jnp.abs(out - ref)))
    assert jnp.allclose(out, ref, atol=5e-3, rtol=5e-3), max_err

    print("KERNEL_OK")
</pallas_src>

<mosaic_0001>
module attributes {stable_mosaic.version = 11 : i64} {
  func.func @_patch_merger_kernel(%arg0: i32, %arg1: i32, %arg2: memref<16x512xf32, #tpu.memory_space<vmem>>, %arg3: memref<1x128xf32, #tpu.memory_space<vmem>>, %arg4: memref<1x128xf32, #tpu.memory_space<vmem>>, %arg5: memref<512x256xf32, #tpu.memory_space<vmem>>, %arg6: memref<1x256xf32, #tpu.memory_space<vmem>>, %arg7: memref<256x128xf32, #tpu.memory_space<vmem>>, %arg8: memref<1x128xf32, #tpu.memory_space<vmem>>, %arg9: memref<16x128xf32, #tpu.memory_space<vmem>>, %arg10: memref<16x512xf32, #tpu.memory_space<vmem>>, %arg11: memref<16x128xf32, #tpu.memory_space<vmem>>) attributes {dimension_semantics = [#tpu.dimension_semantics<parallel>, #tpu.dimension_semantics<arbitrary>], iteration_bounds = array<i64: 2, 2>, scalar_prefetch = 0 : i64, scratch_operands = 2 : i64, tpu.core_type = #tpu.core_type<tc>, window_params = [{transform_indices = @transform_0, window_bounds = array<i64: 16, 512>}, {pipeline_mode = #tpu.pipeline_mode<synchronous>, transform_indices = @transform_1, window_bounds = array<i64: 1, 128>}, {pipeline_mode = #tpu.pipeline_mode<synchronous>, transform_indices = @transform_2, window_bounds = array<i64: 1, 128>}, {transform_indices = @transform_3, window_bounds = array<i64: 512, 256>}, {transform_indices = @transform_4, window_bounds = array<i64: 1, 256>}, {transform_indices = @transform_5, window_bounds = array<i64: 256, 128>}, {pipeline_mode = #tpu.pipeline_mode<synchronous>, transform_indices = @transform_6, window_bounds = array<i64: 1, 128>}, {transform_indices = @transform_7, window_bounds = array<i64: 16, 128>}]} {
    %c0_i32 = arith.constant 0 : i32
    %0 = arith.cmpi eq, %arg1, %c0_i32 : i32
    %1 = arith.extui %0 : i1 to i32
    %c0_i32_0 = arith.constant 0 : i32
    %2 = arith.cmpi ne, %1, %c0_i32_0 : i32
    scf.if %2 {
      %c0_17 = arith.constant 0 : index
      %c0_18 = arith.constant 0 : index
      %28 = vector.load %arg3[%c0_17, %c0_18] : memref<1x128xf32, #tpu.memory_space<vmem>>, vector<1x128xf32>
      %c0_19 = arith.constant 0 : index
      %c0_20 = arith.constant 0 : index
      %29 = vector.load %arg4[%c0_19, %c0_20] : memref<1x128xf32, #tpu.memory_space<vmem>>, vector<1x128xf32>
      %c0_21 = arith.constant 0 : index
      %c0_22 = arith.constant 0 : index
      %30 = vector.load %arg2[%c0_21, %c0_22] : memref<16x512xf32, #tpu.memory_space<vmem>>, vector<16x128xf32>
      %cst_23 = arith.constant dense<0.000000e+00> : vector<16xf32>
      %31 = vector.multi_reduction <add>, %30, %cst_23 [1] : vector<16x128xf32> to vector<16xf32>
      %32 = vector.shape_cast %31 : vector<16xf32> to vector<16x1xf32>
      %cst_24 = arith.constant 1.280000e+02 : f32
      %33 = vector.broadcast %cst_24 : f32 to vector<16x1xf32>
      %34 = arith.divf %32, %33 : vector<16x1xf32>
      %35 = vector.broadcast %34 : vector<16x1xf32> to vector<16x128xf32>
      %36 = arith.subf %30, %35 : vector<16x128xf32>
      %37 = arith.mulf %36, %36 : vector<16x128xf32>
      %cst_25 = arith.constant dense<0.000000e+00> : vector<16xf32>
      %38 = vector.multi_reduction <add>, %37, %cst_25 [1] : vector<16x128xf32> to vector<16xf32>
      %39 = vector.shape_cast %38 : vector<16xf32> to vector<16x1xf32>
      %cst_26 = arith.constant 1.280000e+02 : f32
      %40 = vector.broadcast %cst_26 : f32 to vector<16x1xf32>
      %41 = arith.divf %39, %40 : vector<16x1xf32>
      %cst_27 = arith.constant 9.99999997E-7 : f32
      %42 = vector.broadcast %cst_27 : f32 to vector<16x1xf32>
      %43 = arith.addf %41, %42 : vector<16x1xf32>
      %44 = math.rsqrt %43 : vector<16x1xf32>
      %45 = vector.broadcast %44 : vector<16x1xf32> to vector<16x128xf32>
      %46 = arith.mulf %36, %45 : vector<16x128xf32>
      %47 = vector.broadcast %28 : vector<1x128xf32> to vector<16x128xf32>
      %48 = arith.mulf %46, %47 : vector<16x128xf32>
      %49 = vector.broadcast %29 : vector<1x128xf32> to vector<16x128xf32>
      %50 = arith.addf %48, %49 : vector<16x128xf32>
      %c0_28 = arith.constant 0 : index
      %c0_29 = arith.constant 0 : index
      %51 = vector.load %arg10[%c0_28, %c0_29] : memref<16x512xf32, #tpu.memory_space<vmem>>, vector<16x128xf32>
      tpu.vector_store %arg10[%c0_28, %c0_29], %50 {strides = array<i32>} : memref<16x512xf32, #tpu.memory_space<vmem>>, vector<16x128xf32>,
      %c0_30 = arith.constant 0 : index
      %c128 = arith.constant 128 : index
      %52 = vector.load %arg2[%c0_30, %c128] : memref<16x512xf32, #tpu.memory_space<vmem>>, vector<16x128xf32>
      %cst_31 = arith.constant dense<0.000000e+00> : vector<16xf32>
      %53 = vector.multi_reduction <add>, %52, %cst_31 [1] : vector<16x128xf32> to vector<16xf32>
      %54 = vector.shape_cast %53 : vector<16xf32> to vector<16x1xf32>
      %cst_32 = arith.constant 1.280000e+02 : f32
      %55 = vector.broadcast %cst_32 : f32 to vector<16x1xf32>
      %56 = arith.divf %54, %55 : vector<16x1xf32>
      %57 = vector.broadcast %56 : vector<16x1xf32> to vector<16x128xf32>
      %58 = arith.subf %52, %57 : vector<16x128xf32>
      %59 = arith.mulf %58, %58 : vector<16x128xf32>
      %cst_33 = arith.constant dense<0.000000e+00> : vector<16xf32>
      %60 = vector.multi_reduction <add>, %59, %cst_33 [1] : vector<16x128xf32> to vector<16xf32>
      %61 = vector.shape_cast %60 : vector<16xf32> to vector<16x1xf32>
      %cst_34 = arith.constant 1.280000e+02 : f32
      %62 = vector.broadcast %cst_34 : f32 to vector<16x1xf32>
      %63 = arith.divf %61, %62 : vector<16x1xf32>
      %cst_35 = arith.constant 9.99999997E-7 : f32
      %64 = vector.broadcast %cst_35 : f32 to vector<16x1xf32>
      %65 = arith.addf %63, %64 : vector<16x1xf32>
      %66 = math.rsqrt %65 : vector<16x1xf32>
      %67 = vector.broadcast %66 : vector<16x1xf32> to vector<16x128xf32>
      %68 = arith.mulf %58, %67 : vector<16x128xf32>
      %69 = vector.broadcast %28 : vector<1x128xf32> to vector<16x128xf32>
      %70 = arith.mulf %68, %69 : vector<16x128xf32>
      %71 = vector.broadcast %29 : vector<1x128xf32> to vector<16x128xf32>
      %72 = arith.addf %70, %71 : vector<16x128xf32>
      %c0_36 = arith.constant 0 : index
      %c128_37 = arith.constant 128 : index
      %73 = vector.load %arg10[%c0_36, %c128_37] : memref<16x512xf32, #tpu.memory_space<vmem>>, vector<16x128xf32>
      tpu.vector_store %arg10[%c0_36, %c128_37], %72 {strides = array<i32>} : memref<16x512xf32, #tpu.memory_space<vmem>>, vector<16x128xf32>,
      %c0_38 = arith.constant 0 : index
      %c256 = arith.constant 256 : index
      %74 = vector.load %arg2[%c0_38, %c256] : memref<16x512xf32, #tpu.memory_space<vmem>>, vector<16x128xf32>
      %cst_39 = arith.constant dense<0.000000e+00> : vector<16xf32>
      %75 = vector.multi_reduction <add>, %74, %cst_39 [1] : vector<16x128xf32> to vector<16xf32>
      %76 = vector.shape_cast %75 : vector<16xf32> to vector<16x1xf32>
      %cst_40 = arith.constant 1.280000e+02 : f32
      %77 = vector.broadcast %cst_40 : f32 to vector<16x1xf32>
      %78 = arith.divf %76, %77 : vector<16x1xf32>
      %79 = vector.broadcast %78 : vector<16x1xf32> to vector<16x128xf32>
      %80 = arith.subf %74, %79 : vector<16x128xf32>
      %81 = arith.mulf %80, %80 : vector<16x128xf32>
      %cst_41 = arith.constant dense<0.000000e+00> : vector<16xf32>
      %82 = vector.multi_reduction <add>, %81, %cst_41 [1] : vector<16x128xf32> to vector<16xf32>
      %83 = vector.shape_cast %82 : vector<16xf32> to vector<16x1xf32>
      %cst_42 = arith.constant 1.280000e+02 : f32
      %84 = vector.broadcast %cst_42 : f32 to vector<16x1xf32>
      %85 = arith.divf %83, %84 : vector<16x1xf32>
      %cst_43 = arith.constant 9.99999997E-7 : f32
      %86 = vector.broadcast %cst_43 : f32 to vector<16x1xf32>
      %87 = arith.addf %85, %86 : vector<16x1xf32>
      %88 = math.rsqrt %87 : vector<16x1xf32>
      %89 = vector.broadcast %88 : vector<16x1xf32> to vector<16x128xf32>
      %90 = arith.mulf %80, %89 : vector<16x128xf32>
      %91 = vector.broadcast %28 : vector<1x128xf32> to vector<16x128xf32>
      %92 = arith.mulf %90, %91 : vector<16x128xf32>
      %93 = vector.broadcast %29 : vector<1x128xf32> to vector<16x128xf32>
      %94 = arith.addf %92, %93 : vector<16x128xf32>
      %c0_44 = arith.constant 0 : index
      %c256_45 = arith.constant 256 : index
      %95 = vector.load %arg10[%c0_44, %c256_45] : memref<16x512xf32, #tpu.memory_space<vmem>>, vector<16x128xf32>
      tpu.vector_store %arg10[%c0_44, %c256_45], %94 {strides = array<i32>} : memref<16x512xf32, #tpu.memory_space<vmem>>, vector<16x128xf32>,
      %c0_46 = arith.constant 0 : index
      %c384 = arith.constant 384 : index
      %96 = vector.load %arg2[%c0_46, %c384] : memref<16x512xf32, #tpu.memory_space<vmem>>, vector<16x128xf32>
      %cst_47 = arith.constant dense<0.000000e+00> : vector<16xf32>
      %97 = vector.multi_reduction <add>, %96, %cst_47 [1] : vector<16x128xf32> to vector<16xf32>
      %98 = vector.shape_cast %97 : vector<16xf32> to vector<16x1xf32>
      %cst_48 = arith.constant 1.280000e+02 : f32
      %99 = vector.broadcast %cst_48 : f32 to vector<16x1xf32>
      %100 = arith.divf %98, %99 : vector<16x1xf32>
      %101 = vector.broadcast %100 : vector<16x1xf32> to vector<16x128xf32>
      %102 = arith.subf %96, %101 : vector<16x128xf32>
      %103 = arith.mulf %102, %102 : vector<16x128xf32>
      %cst_49 = arith.constant dense<0.000000e+00> : vector<16xf32>
      %104 = vector.multi_reduction <add>, %103, %cst_49 [1] : vector<16x128xf32> to vector<16xf32>
      %105 = vector.shape_cast %104 : vector<16xf32> to vector<16x1xf32>
      %cst_50 = arith.constant 1.280000e+02 : f32
      %106 = vector.broadcast %cst_50 : f32 to vector<16x1xf32>
      %107 = arith.divf %105, %106 : vector<16x1xf32>
      %cst_51 = arith.constant 9.99999997E-7 : f32
      %108 = vector.broadcast %cst_51 : f32 to vector<16x1xf32>
      %109 = arith.addf %107, %108 : vector<16x1xf32>
      %110 = math.rsqrt %109 : vector<16x1xf32>
      %111 = vector.broadcast %110 : vector<16x1xf32> to vector<16x128xf32>
      %112 = arith.mulf %102, %111 : vector<16x128xf32>
      %113 = vector.broadcast %28 : vector<1x128xf32> to vector<16x128xf32>
      %114 = arith.mulf %112, %113 : vector<16x128xf32>
      %115 = vector.broadcast %29 : vector<1x128xf32> to vector<16x128xf32>
      %116 = arith.addf %114, %115 : vector<16x128xf32>
      %c0_52 = arith.constant 0 : index
      %c384_53 = arith.constant 384 : index
      %117 = vector.load %arg10[%c0_52, %c384_53] : memref<16x512xf32, #tpu.memory_space<vmem>>, vector<16x128xf32>
      tpu.vector_store %arg10[%c0_52, %c384_53], %116 {strides = array<i32>} : memref<16x512xf32, #tpu.memory_space<vmem>>, vector<16x128xf32>,
    } else {
    }
    %c0 = arith.constant 0 : index
    %c0_1 = arith.constant 0 : index
    %3 = vector.load %arg10[%c0, %c0_1] : memref<16x512xf32, #tpu.memory_space<vmem>>, vector<16x512xf32>
    %c0_2 = arith.constant 0 : index
    %c0_3 = arith.constant 0 : index
    %4 = vector.load %arg5[%c0_2, %c0_3] : memref<512x256xf32, #tpu.memory_space<vmem>>, vector<512x256xf32>
    %cst = arith.constant dense<0.000000e+00> : vector<16x256xf32>
    %5 = tpu.matmul %3, %4, %cst {dimension_numbers = #tpu.dot_dimension_numbers<[1], [0], [0], [1], [0, 0, 1, 1], [], []>} : vector<16x512xf32>, vector<512x256xf32>, vector<16x256xf32> -> vector<16x256xf32>
    %c0_4 = arith.constant 0 : index
    %c0_5 = arith.constant 0 : index
    %6 = vector.load %arg6[%c0_4, %c0_5] : memref<1x256xf32, #tpu.memory_space<vmem>>, vector<1x256xf32>
    %7 = vector.broadcast %6 : vector<1x256xf32> to vector<16x256xf32>
    %8 = arith.addf %5, %7 : vector<16x256xf32>
    %cst_6 = arith.constant 5.000000e-01 : f32
    %9 = vector.broadcast %cst_6 : f32 to vector<16x256xf32>
    %10 = arith.mulf %9, %8 : vector<16x256xf32>
    %cst_7 = arith.constant 0.707106769 : f32
    %11 = vector.broadcast %cst_7 : f32 to vector<16x256xf32>
    %12 = arith.mulf %8, %11 : vector<16x256xf32>
    %13 = math.erf %12 : vector<16x256xf32>
    %cst_8 = arith.constant 1.000000e+00 : f32
    %14 = vector.broadcast %cst_8 : f32 to vector<16x256xf32>
    %15 = arith.addf %14, %13 : vector<16x256xf32>
    %16 = arith.mulf %10, %15 : vector<16x256xf32>
    %c0_9 = arith.constant 0 : index
    %c0_10 = arith.constant 0 : index
    %17 = vector.load %arg7[%c0_9, %c0_10] : memref<256x128xf32, #tpu.memory_space<vmem>>, vector<256x128xf32>
    %cst_11 = arith.constant dense<0.000000e+00> : vector<16x128xf32>
    %18 = tpu.matmul %16, %17, %cst_11 {dimension_numbers = #tpu.dot_dimension_numbers<[1], [0], [0], [1], [0, 0, 1, 1], [], []>} : vector<16x256xf32>, vector<256x128xf32>, vector<16x128xf32> -> vector<16x128xf32>
    %c0_i32_12 = arith.constant 0 : i32
    %19 = arith.cmpi eq, %arg1, %c0_i32_12 : i32
    %20 = arith.extui %19 : i1 to i32
    %c0_i32_13 = arith.constant 0 : i32
    %21 = arith.cmpi ne, %20, %c0_i32_13 : i32
    scf.if %21 {
      %c0_17 = arith.constant 0 : index
      %c0_18 = arith.constant 0 : index
      %28 = vector.load %arg8[%c0_17, %c0_18] : memref<1x128xf32, #tpu.memory_space<vmem>>, vector<1x128xf32>
      %29 = vector.broadcast %28 : vector<1x128xf32> to vector<16x128xf32>
      %30 = arith.addf %18, %29 : vector<16x128xf32>
      %c0_19 = arith.constant 0 : index
      %c0_20 = arith.constant 0 : index
      %31 = vector.load %arg11[%c0_19, %c0_20] : memref<16x128xf32, #tpu.memory_space<vmem>>, vector<16x128xf32>
      tpu.vector_store %arg11[%c0_19, %c0_20], %30 {strides = array<i32>} : memref<16x128xf32, #tpu.memory_space<vmem>>, vector<16x128xf32>,
    } else {
    }
    %c0_i32_14 = arith.constant 0 : i32
    %22 = arith.cmpi sgt, %arg1, %c0_i32_14 : i32
    %23 = arith.extui %22 : i1 to i32
    %c0_i32_15 = arith.constant 0 : i32
    %24 = arith.cmpi ne, %23, %c0_i32_15 : i32
    scf.if %24 {
      %c0_17 = arith.constant 0 : index
      %c0_18 = arith.constant 0 : index
      %28 = vector.load %arg11[%c0_17, %c0_18] : memref<16x128xf32, #tpu.memory_space<vmem>>, vector<16x128xf32>
      %29 = arith.addf %28, %18 : vector<16x128xf32>
      %c0_19 = arith.constant 0 : index
      %c0_20 = arith.constant 0 : index
      %30 = vector.load %arg11[%c0_19, %c0_20] : memref<16x128xf32, #tpu.memory_space<vmem>>, vector<16x128xf32>
      tpu.vector_store %arg11[%c0_19, %c0_20], %29 {strides = array<i32>} : memref<16x128xf32, #tpu.memory_space<vmem>>, vector<16x128xf32>,
    } else {
    }
    %c1_i32 = arith.constant 1 : i32
    %25 = arith.cmpi eq, %arg1, %c1_i32 : i32
    %26 = arith.extui %25 : i1 to i32
    %c0_i32_16 = arith.constant 0 : i32
    %27 = arith.cmpi ne, %26, %c0_i32_16 : i32
    scf.if %27 {
      %c0_17 = arith.constant 0 : index
      %c0_18 = arith.constant 0 : index
      %28 = vector.load %arg11[%c0_17, %c0_18] : memref<16x128xf32, #tpu.memory_space<vmem>>, vector<16x128xf32>
      %c0_19 = arith.constant 0 : index
      %c0_20 = arith.constant 0 : index
      %29 = vector.load %arg9[%c0_19, %c0_20] : memref<16x128xf32, #tpu.memory_space<vmem>>, vector<16x128xf32>
      tpu.vector_store %arg9[%c0_19, %c0_20], %28 {strides = array<i32>} : memref<16x128xf32, #tpu.memory_space<vmem>>, vector<16x128xf32>,
    } else {
    }
    return
  }
  func.func @transform_0(%arg0: i32, %arg1: i32) -> (i32, i32) {
    %c0_i32 = arith.constant 0 : i32
    %c0_i32_0 = arith.constant 0 : i32
    return %arg0, %c0_i32 : i32, i32
  }
  func.func @transform_1(%arg0: i32, %arg1: i32) -> (i32, i32) {
    %c0_i32 = arith.constant 0 : i32
    %c0_i32_0 = arith.constant 0 : i32
    %c0_i32_1 = arith.constant 0 : i32
    return %c0_i32, %c0_i32_0 : i32, i32
  }
  func.func @transform_2(%arg0: i32, %arg1: i32) -> (i32, i32) {
    %c0_i32 = arith.constant 0 : i32
    %c0_i32_0 = arith.constant 0 : i32
    %c0_i32_1 = arith.constant 0 : i32
    return %c0_i32, %c0_i32_0 : i32, i32
  }
  func.func @transform_3(%arg0: i32, %arg1: i32) -> (i32, i32) {
    %c0_i32 = arith.constant 0 : i32
    %c0_i32_0 = arith.constant 0 : i32
    return %c0_i32, %arg1 : i32, i32
  }
  func.func @transform_4(%arg0: i32, %arg1: i32) -> (i32, i32) {
    %c0_i32 = arith.constant 0 : i32
    %c0_i32_0 = arith.constant 0 : i32
    return %c0_i32, %arg1 : i32, i32
  }
  func.func @transform_5(%arg0: i32, %arg1: i32) -> (i32, i32) {
    %c0_i32 = arith.constant 0 : i32
    %c0_i32_0 = arith.constant 0 : i32
    return %arg1, %c0_i32 : i32, i32
  }
  func.func @transform_6(%arg0: i32, %arg1: i32) -> (i32, i32) {
    %c0_i32 = arith.constant 0 : i32
    %c0_i32_0 = arith.constant 0 : i32
    %c0_i32_1 = arith.constant 0 : i32
    return %c0_i32, %c0_i32_0 : i32, i32
  }
  func.func @transform_7(%arg0: i32, %arg1: i32) -> (i32, i32) {
    %c0_i32 = arith.constant 0 : i32
    %c0_i32_0 = arith.constant 0 : i32
    return %arg0, %c0_i32 : i32, i32
  }
}

</mosaic_0001>

<bundles_post_ra>
// kernel: patch_merger.1
= control target key start
LH: loop header
LB: loop body
LE: loop exit
PB: predicated region body
PF: predicated region fallthrough
CT: control target
= control target key end

     0   :  { %s2284_s0 = inlined_call_operand.vmem [shape: f32[32,512], index: 0, kind: input, shape index: {}]   ;;  %s2285_s1 = inlined_call_operand.vmem [shape: f32[1,128], index: 1, kind: input, shape index: {}]   ;;  %s2286_s2 = inlined_call_operand.vmem [shape: f32[1,128], index: 2, kind: input, shape index: {}]   ;;  %s2287_s3 = inlined_call_operand.hbm [shape: f32[512,512], index: 3, kind: input, shape index: {}]   ;;  %s2288_s4 = inlined_call_operand.vmem [shape: f32[1,512], index: 4, kind: input, shape index: {}]   ;;  %s2289_s5 = inlined_call_operand.hbm [shape: f32[512,128], index: 5, kind: input, shape index: {}]   ;;  %s2290_s6 = inlined_call_operand.vmem [shape: f32[1,128], index: 6, kind: input, shape index: {}]   ;;  %s2291_s7 = inlined_call_operand.hbm [shape: f32[32,128], index: 7, kind: output, shape index: {}]  }
   0x1   :  { %2301 = sst [smem:[#allocation22_spill]] %s2287_s3 }
   0x2   :  { %12 = vsyncpa [#allocation5], 0 }
   0x3   :  { %14 = vsyncpa [#allocation5 + $0x1], 0 }
   0x4   :  { %15 = vsyncpa [#allocation8], 0 }
   0x5   :  { %17 = vsyncpa [#allocation8 + $0x1], 0 }
   0x6   :  { %18 = vsyncpa [#allocation6], 0 }
   0x7   :  { %20 = vsyncpa [#allocation6 + $0x1], 0  ;;  %s1770_s24 = smov 0   ;;  %s1772_s25 = smov 0  }
   0x8   :  { %s1774_s26 = smov 0   ;;  %s1776_s27 = smov 0  }
   0x9   :  { %s1778_s28 = smov 0   ;;  %s1780_s29 = smov 0  }
   0xa   :  { %s1782_s30 = smov 0   ;;  %s1784_s8 = smov 0  }
   0xb   :  { %s1786_s9 = smov 0   ;;  %s1788_s10 = smov 0  }
   0xc   :  { %s1790_s11 = smov 0  }
   0xd LB: > { %2302 = sst [smem:[#allocation13_spill]] %s1678_s24  ;;  %s1138_s12 = sadd.s32 4294967295, %s1718_s11   ;;  %s1718_s11 = sphi %s1790_s11, %s26_s11   ;;  %s1714_s10 = sphi %s1788_s10, %s2331_s10   ;;  %s1710_s9 = sphi %s1786_s9, %s2338_s9   ;;  %s1706_s8 = sphi %s1784_s8, %s2337_s8   ;;  %s1702_s30 = sphi %s1782_s30, %s2336_s30   ;;  %s1698_s29 = sphi %s1780_s29, %s2328_s29   ;;  %s1694_s28 = sphi %s1778_s28, %s2335_s28   ;;  %s1690_s27 = sphi %s1776_s27, %s2334_s27   ;;  %s1686_s26 = sphi %s1774_s26, %s2326_s26   ;;  %s1682_s25 = sphi %s1772_s25, %s2333_s25   ;;  %s1678_s24 = sphi %s1770_s24, %s2332_s24  }
   0xe   : > { %2303 = sst [smem:[#allocation14_spill]] %s1686_s26  ;;  %s1139_s13 = sadd.s32 4294967294, %s1718_s11  }
   0xf   : > { %2304 = sst [smem:[#allocation15_spill]] %s1698_s29  ;;  %s35_s14 = sadd.s32 1, %s1710_s9 }
  0x10   : > { %2305 = sst [smem:[#allocation16_spill]] %s1714_s10  ;;  %s38_s15 = sadd.s32 1, %s1714_s10 }
  0x11   : > { %p36_p0 = scmp.ge.s32.totalorder %s35_s14, 2  ;;  %s113_s16 = sadd.s32 1, %s1698_s29 }
  0x12   : > { %p120_p1 = scmp.ne.s32.totalorder %s1698_s29, %s1694_s28  ;;  %p121_p2 = scmp.eq.s32.totalorder %s1718_s11, 0 }
  0x13   : > { %s2340_s14 = smov (%p36_p0, %s35_s14), 0  ;;  %s2342_s15 = smov (!%p36_p0, %s38_s15), %s1714_s10 }
  0x14   : > { %2306 = sst [smem:[#allocation17_spill]] %s2340_s14  ;;  %s110_s17 = ssub.s32 %s1710_s9, %s2340_s14 }
  0x15   : > { %p1836_p3 = por %p121_p2, %p120_p1  ;;  %p40_p4 = scmp.ge.s32.totalorder %s2342_s15, 2 }
  0x16   : > { %p111_p5 = scmp.eq.s32.totalorder %s110_s17, 0  ;;  %p126_p6 = scmp.ne.s32.totalorder %s1694_s28, %s1690_s27 }
  0x17   : > { %p127_p7 = scmp.eq.s32.totalorder %s1138_s12, 0  ;;  %s2344_s15 = smov (%p40_p4, %s2342_s15), 0 }
  0x18   : > { %2308 = sst [smem:[#allocation18_spill]] %s2344_s15  ;;  %s209_s21 = ssub.s32 %s1714_s10, %s2344_s15 }
  0x19   : > { %s1844_s19 = scalar_select %p111_p5, %s1698_s29, %s113_s16  }
  0x1a   : > { %p1846_p8 = por %p127_p7, %p126_p6  ;;  %p210_p9 = scmp.eq.s32.totalorder %s209_s21, 0 }
  0x1b   : > { %2309 = sst [smem:[#allocation19_spill]] %s1844_s19  ;;  %s212_s22 = sadd.s32 1, %s1686_s26 }
  0x1c   : > { %s2310_s20 = scalar_select %p1846_p8, 1, 0 }
  0x1d   : > { %p222_p10 = scmp.ne.s32.totalorder %s1686_s26, %s1682_s25  ;;  %p223_p11 = scmp.eq.s32.totalorder %s1138_s12, 3 }
  0x1e   : > { %s1856_s23 = scalar_select %p210_p9, %s1686_s26, %s212_s22  }
  0x1f   : > { %p1858_p12 = por %p223_p11, %p222_p10  ;;  %p228_p13 = scmp.ne.s32.totalorder %s1682_s25, %s1678_s24 }
  0x20   : > { %2311 = sst [smem:[#allocation20_spill]] %s1856_s23  ;;  %p229_p0 = scmp.eq.s32.totalorder %s1139_s13, 3 }
  0x21   : > { %s2312_s27 = scalar_select %p1858_p12, 1, 0 }
  0x22   : > { %p1411_p1 = scmp.lt.s32.totalorder %s1718_s11, 4  ;;  %s1866_s16 = sand.u32 1, %s1698_s29  }
  0x23   : > { %p1868_p2 = por %p229_p0, %p228_p13  ;;  %s1142_s21 = sshll.u32 %s1866_s16, 10 }
  0x24   : > { %s1168_s15 = sshll.u32 %s1710_s9, 8  ;;  %s2315_s3 = sld [smem:[#allocation22_spill]] }
  0x25   : > { %s2313_s17 = scalar_select %p1868_p2, 1, 0 }
  0x26   : > { %s272_s13 = scalar_lea.vmem [#allocation4], %s1142_s21  ;;  %p1881_p4 = pnand %p1411_p1, %p1836_p3 }
  0x27   : > { %2314 = sst [smem:[#allocation21_spill]] %s2313_s17  ;;  %s279_s10 = sshll.u32 %s272_s13, 4  ;;  %s1885_s10 = int_to_ptr.vmem [resolvable:$true] %s279_s10 }
  0x28   : > { %p1534_p7 = pneg %p1881_p4 }
  0x2a   : > { %s1877_s14 = scalar_lea.hbm %s2315_s3, %s1168_s15  ;;  %s1537_s21 = scalar_lea.hbm %s2315_s3, 32768 }
  0x2b   : > { %s1532_s12 = scalar_lea.hbm %s1877_s14, 16384  ;;  %p1538_p3 = scmp.lt.u32.totalorder %s1877_s14, %s2315_s3 }
  0x2c   : > { %p1533_p6 = scmp.ne.s32.totalorder %s1877_s14, %s1532_s12  ;;  %p1539_p11 = scmp.lt.u32.totalorder %s1537_s21, %s1532_s12 }
  0x2d   : > { %p1541_p0 = scmp.lt.u32.totalorder %s1532_s12, %s1877_s14 }
  0x2e   : > { %p1535_p9 = pnand %p1534_p7, %p1533_p6  ;;  %p1540_p13 = por %p1539_p11, %p1538_p3 }
  0x30   : > { %p1536_p10 = pneg %p1535_p9  ;;  %p1542_p1 = por %p1541_p0, %p1540_p13 }
  0x32   : > { %p1543_p5 = pnand %p1542_p1, %p1536_p10 }
  0x34   : > { %1546 = shalt.err (!%p1543_p5)
}
  0x35   : > { %s1547_s29 = scalar_lea.vmem %s1885_s10, 16384  ;;  %s1720_s15 = smov [#allocation4]  }
  0x36   : > { %p1548_p6 = scmp.ne.s32.totalorder %s1885_s10, %s1547_s29  ;;  %s1552_s18 = sshll.u32 %s1720_s15, 4  ;;  %s1553_s18 = int_to_ptr.vmem [resolvable:$false] %s1552_s18 }
  0x37   : > { %s1554_s22 = scalar_lea.vmem %s1553_s18, 32768  ;;  %p1555_p12 = scmp.lt.s32.totalorder %s1885_s10, %s1553_s18 }
  0x38   : > { %p1550_p9 = pnand %p1548_p6, %p1534_p7  ;;  %p1556_p3 = scmp.lt.s32.totalorder %s1554_s22, %s1547_s29 }
  0x3a   : > { %p1551_p2 = pneg %p1550_p9  ;;  %p1557_p11 = por %p1556_p3, %p1555_p12 }
  0x3c   : > { %p1558_p13 = pnand %p1557_p11, %p1551_p2 }
  0x3e   : > { %1561 = shalt.err (!%p1558_p13)
}
  0x3f   : > { %s1721_s12 = smov 512   ;;  %s1722_s21 = smov 256  }
  0x40   : > { %s1723_s13 = smov 16   ;;  %s2317_s15 = scalar_lea.sflag [#allocation5], %s1866_s16 }
  0x41   : > { %1403 = dma.hbm_to_vmem [thread:$0]  (!%p1881_p4), %s1877_s14, 16384, %s1885_s10, %s2317_s15, %s1721_s12, %s1722_s21, %s1723_s13  }
  0x42   : > { %p316_p5 = scmp.lt.s32.totalorder %s1718_s11, 5  ;;  %s1145_s29 = sshll.u32 %s1866_s16, 8 }
  0x43   : > { %s1169_s18 = sshll.u32 %s1710_s9, 12  ;;  %p2318_p12 = scmp.ge.s32.totalorder %s1718_s11, 1 }
  0x44   : > { %s1928_s26 = scalar_lea.hbm %s2289_s5, %s1169_s18  ;;  %s301_s17 = scalar_lea.vmem [#allocation7], %s1145_s29 }
  0x45   : > { %p1921_p2 = pnand %p2318_p12, %p316_p5  ;;  %s308_s24 = sshll.u32 %s301_s17, 4  ;;  %s1930_s24 = int_to_ptr.vmem [resolvable:$true] %s308_s24 }
  0x46   : > { %s298_s10 = scalar_lea.sflag [#allocation8], %s1866_s16  ;;  %s1562_s14 = scalar_lea.hbm %s1928_s26, 4096 }
  0x47   : > { %p1563_p10 = scmp.ne.s32.totalorder %s1928_s26, %s1562_s14  ;;  %s1567_s3 = scalar_lea.hbm %s2289_s5, 8192 }
  0x48   : > { %p1568_p6 = scmp.lt.u32.totalorder %s1928_s26, %s2289_s5  ;;  %p1569_p9 = scmp.lt.u32.totalorder %s1567_s3, %s1562_s14 }
  0x49   : > { %p1565_p0 = pnand %p1563_p10, %p1534_p7  ;;  %p1571_p11 = scmp.lt.u32.totalorder %s1562_s14, %s1928_s26 }
  0x4a   : > { %p1570_p3 = por %p1569_p9, %p1568_p6 }
  0x4b   : > { %p1566_p1 = pneg %p1565_p0 }
  0x4c   : > { %p1572_p13 = por %p1571_p11, %p1570_p3 }
  0x4e   : > { %p1573_p5 = pnand %p1572_p13, %p1566_p1 }
  0x50   : > { %1576 = shalt.err (!%p1573_p5)
}
  0x51   : > { %s1577_s17 = scalar_lea.vmem %s1930_s24, 4096  ;;  %s1724_s15 = smov [#allocation7]  }
  0x52   : > { %p1578_p12 = scmp.ne.s32.totalorder %s1930_s24, %s1577_s17  ;;  %s1582_s29 = sshll.u32 %s1724_s15, 4  ;;  %s1583_s29 = int_to_ptr.vmem [resolvable:$false] %s1582_s29 }
  0x53   : > { %s1584_s18 = scalar_lea.vmem %s1583_s29, 8192  ;;  %p1585_p8 = scmp.lt.s32.totalorder %s1930_s24, %s1583_s29 }
  0x54   : > { %p1580_p10 = pnand %p1578_p12, %p1534_p7  ;;  %p1586_p6 = scmp.lt.s32.totalorder %s1584_s18, %s1577_s17 }
  0x56   : > { %p1581_p0 = pneg %p1580_p10  ;;  %p1587_p9 = por %p1586_p6, %p1585_p8 }
  0x58   : > { %p1588_p3 = pnand %p1587_p9, %p1581_p0 }
  0x5a   : > { %1591 = shalt.err (!%p1588_p3)
}
  0x5b   : > { %s1725_s14 = smov 128   ;;  %s1726_s12 = smov 8  }
  0x5c   : > { %1406 = dma.hbm_to_vmem [thread:$0]  (!%p1881_p4), %s1928_s26, 4096, %s1930_s24, %s298_s10, %s1725_s14, %s1725_s14, %s1726_s12  }
  0x5d   : > { %320 = sbr.rel (%p1921_p2) target bundleno = 1008 (0x3f0), region = 48  ;;  %s322_s21 = sand.u32 (!%p1921_p2), 1, %s1694_s28  }
  0x5e   : > { %s1149_s3 = sshll.u32 (!%p1921_p2), %s322_s21, 10  ;;  %s323_s23 = scalar_lea.sflag (!%p1921_p2), [#allocation5], %s322_s21 }
  0x5f   : > { %s1961_s13 = scalar_lea.vmem (!%p1921_p2), [#allocation4], %s1149_s3  ;;  %p2320_p8 = scmp.ne.s32.totalorder (!%p1921_p2), %s2310_s20, 0 }
  0x64   : > { %1665 = dma.done.wait (%p2320_p8), %s323_s23, 16384  }
  0x65   : > { %1667 = vsyncadd (%p2320_p8), %s323_s23, 4294950912  ;;  %s1150_s17 = sshll.u32 %s322_s21, 8  ;;  %s332_s19 = scalar_lea.sflag [#allocation8], %s322_s21 }
  0x66   : > { %s1967_s16 = scalar_lea.vmem [#allocation7], %s1150_s17 }
  0x67   : > { %1669 = dma.done.wait (%p2320_p8), %s332_s19, 4096  }
  0x68   : > { %1671 = vsyncadd (%p2320_p8), %s332_s19, 4294963200  ;;  %s378_s24 = sand.u32 1, %s1682_s25   ;;  %s1152_s26 = sshll.u32 %s1706_s8, 1 }
  0x69   : > { %s1151_s22 = sshll.u32 %s378_s24, 4  ;;  %p382_p4 = scmp.lt.s32.totalorder %s1152_s26, 3 }
  0x6a   : > { %s1155_s10 = sshll.u32 %s1702_s30, 1  ;;  %s1987_s3 = scalar_lea.vmem [#allocation9], %s1151_s22 }
  0x6b   : > { %s2346_s26 = smov (!%p382_p4, %s1152_s26), 3  ;;  %p390_p7 = scmp.lt.s32.totalorder %s1155_s10, 3 }
  0x6c   : > { %s1170_s15 = sshll.u32 %s2346_s26, 5  ;;  %p1156_p2 = scmp.ne.s32.totalorder %s1702_s30, 0 }
  0x6d   : > { %s386_s14 = scalar_lea.vmem %s2284_s0, %s1170_s15  ;;  %s2348_s10 = smov (!%p390_p7, %s1155_s10), 3  ;;  %v1157_v60 = vld [vmem:[%s2285_s1] ss:$0 sm:$0xff] (!%p1156_p2) }
  0x6e   : > { %s392_s21 = scalar_lea.vmem %s2288_s4, %s2348_s10  ;;  %399 = sbr.rel (%p1156_p2) target bundleno = 439 (0x1b7), region = 60  ;;  %v402_v0 = vld [vmem:[%s386_s14] sm:$0xff] (!%p1156_p2)  ;;  %v445_v1 = vld [vmem:[%s386_s14 + $0x8] sm:$0xff] (!%p1156_p2)  ;;  %v475_v4 = vld [vmem:[%s386_s14 + $0x10] sm:$0xff] (!%p1156_p2) }
  0x6f   : > { %404 = vadd.xlane.f32.xlu0 (!%p1156_p2), %v402_v0  ;;  %447 = vadd.xlane.f32.xlu1 (!%p1156_p2), %v445_v1  ;;  %v403_v2 = vld [vmem:[%s386_s14 + $0x20] sm:$0xff] (!%p1156_p2)  ;;  %v446_v3 = vld [vmem:[%s386_s14 + $0x28] sm:$0xff] (!%p1156_p2)  ;;  %v476_v5 = vld [vmem:[%s386_s14 + $0x30] sm:$0xff] (!%p1156_p2) }
  0x70   : > { %v505_v6 = vld [vmem:[%s386_s14 + $0x18] sm:$0xff] (!%p1156_p2) }
  0x71   : > { %v506_v7 = vld [vmem:[%s386_s14 + $0x38] sm:$0xff] (!%p1156_p2) }
  0x73   : > { %406 = vadd.xlane.f32.xlu0 (!%p1156_p2), %v403_v2  ;;  %449 = vadd.xlane.f32.xlu1 (!%p1156_p2), %v446_v3 }
  0x77   : > { %477 = vadd.xlane.f32.xlu0 %v475_v4  ;;  %479 = vadd.xlane.f32.xlu1 %v476_v5 }
  0x7b   : > { %507 = vadd.xlane.f32.xlu0 %v505_v6  ;;  %509 = vadd.xlane.f32.xlu1 %v506_v7 }
  0xfc   : > { %v405_v8 = vpop.xlane.xlu0 %404  ;;  %v448_v9 = vpop.xlane.xlu1 %447 }
  0xfd   : > { %v409_v10 = vmul.f32 0.0078125, %v405_v8  ;;  %v451_v11 = vmul.f32 0.0078125, %v448_v9 }
  0xff   : > { %v1992_v12 = vsub.f32 %v402_v0, %v409_v10  ;;  %v1994_v13 = vsub.f32 %v445_v1, %v451_v11  ;;  %v1158_v1 = vld [vmem:[%s2286_s2] ss:$0 sm:$0xff] }
 0x100   : > { %v407_v14 = vpop.xlane.xlu0 %406  ;;  %v450_v15 = vpop.xlane.xlu1 %449 }
 0x101   : > { %v410_v16 = vmul.f32 0.0078125, %v407_v14  ;;  %v413_v17 = vmul.f32 %v1992_v12, %v1992_v12  ;;  %v452_v18 = vmul.f32 0.0078125, %v450_v15  ;;  %v455_v21 = vmul.f32 %v1994_v13, %v1994_v13 }
 0x103   : > { %v1998_v19 = vsub.f32 %v403_v2, %v410_v16  ;;  %415 = vadd.xlane.f32.xlu0 %v413_v17  ;;  %v2000_v20 = vsub.f32 %v446_v3, %v452_v18 }
 0x104   : > { %v478_v22 = vpop.xlane.xlu0 %477  ;;  %v480_v23 = vpop.xlane.xlu1 %479 }
 0x105   : > { %v481_v24 = vmul.f32 0.0078125, %v478_v22  ;;  %v414_v25 = vmul.f32 %v1998_v19, %v1998_v19  ;;  %v482_v26 = vmul.f32 0.0078125, %v480_v23  ;;  %v456_v29 = vmul.f32 %v2000_v20, %v2000_v20 }
 0x107   : > { %v2006_v27 = vsub.f32 %v475_v4, %v481_v24  ;;  %457 = vadd.xlane.f32.xlu0 %v455_v21  ;;  %417 = vadd.xlane.f32.xlu1 %v414_v25  ;;  %v2008_v28 = vsub.f32 %v476_v5, %v482_v26 }
 0x108   : > { %v508_v30 = vpop.xlane.xlu0 %507  ;;  %v510_v31 = vpop.xlane.xlu1 %509 }
 0x109   : > { %v511_v32 = vmul.f32 0.0078125, %v508_v30  ;;  %v485_v33 = vmul.f32 %v2006_v27, %v2006_v27  ;;  %v512_v34 = vmul.f32 0.0078125, %v510_v31  ;;  %v486_v37 = vmul.f32 %v2008_v28, %v2008_v28 }
 0x10b   : > { %v2014_v35 = vsub.f32 %v505_v6, %v511_v32  ;;  %459 = vadd.xlane.f32.xlu1 %v456_v29  ;;  %487 = vadd.xlane.f32.xlu0 %v485_v33  ;;  %v2016_v36 = vsub.f32 %v506_v7, %v512_v34 }
 0x10d   : > { %v515_v38 = vmul.f32 %v2014_v35, %v2014_v35  ;;  %v516_v39 = vmul.f32 %v2016_v36, %v2016_v36 }
 0x10f   : > { %489 = vadd.xlane.f32.xlu1 %v486_v37  ;;  %517 = vadd.xlane.f32.xlu0 %v515_v38 }
 0x113   : > { %519 = vadd.xlane.f32.xlu1 %v516_v39 }
 0x190   : > { %v416_v40 = vpop.xlane.xlu0 %415 }
 0x191   : > { %v419_v41 = vmul.f32 0.0078125, %v416_v40 }
 0x193   : > { %v421_v42 = vadd.f32 1e-06, %v419_v41 }
 0x194   : > { %v418_v43 = vpop.xlane.xlu1 %417  ;;  %v458_v44 = vpop.xlane.xlu0 %457 }
 0x195   : > { %1508 = vrsqrt.f32 %v421_v42  ;;  %v420_v45 = vmul.f32 0.0078125, %v418_v43  ;;  %v461_v46 = vmul.f32 0.0078125, %v458_v44 }
 0x197   : > { %v422_v47 = vadd.f32 1e-06, %v420_v45  ;;  %v463_v48 = vadd.f32 1e-06, %v461_v46 }
 0x198   : > { %v460_v49 = vpop.xlane.xlu1 %459  ;;  %v488_v50 = vpop.xlane.xlu0 %487 }
 0x199   : > { %1510 = vrsqrt.f32 %v422_v47  ;;  %v462_v51 = vmul.f32 0.0078125, %v460_v49  ;;  %v491_v52 = vmul.f32 0.0078125, %v488_v50 }
 0x19a   : > { %1512 = vrsqrt.f32 %v463_v48 }
 0x19b   : > { %v464_v53 = vadd.f32 1e-06, %v462_v51  ;;  %v493_v54 = vadd.f32 1e-06, %v491_v52 }
 0x19c   : > { %v490_v55 = vpop.xlane.xlu1 %489  ;;  %v518_v56 = vpop.xlane.xlu0 %517 }
 0x19d   : > { %1514 = vrsqrt.f32 %v464_v53  ;;  %v492_v57 = vmul.f32 0.0078125, %v490_v55  ;;  %v521_v58 = vmul.f32 0.0078125, %v518_v56 }
 0x19e   : > { %1516 = vrsqrt.f32 %v493_v54 }
 0x19f   : > { %v1509_v59 = vpop.eup %1508  ;;  %v494_v61 = vadd.f32 1e-06, %v492_v57  ;;  %v523_v62 = vadd.f32 1e-06, %v521_v58 }
 0x1a0   : > { %v425_v63 = vmul.f32 %v1509_v59, %v1992_v12  ;;  %v520_v0 = vpop.xlane.xlu1 %519 }
 0x1a1   : > { %1518 = vrsqrt.f32 %v494_v61  ;;  %v522_v2 = vmul.f32 0.0078125, %v520_v0 }
 0x1a2   : > { %v433_v3 = vmul.f32 %v1157_v60, %v425_v63  ;;  %1520 = vrsqrt.f32 %v523_v62 }
 0x1a3   : > { %v1511_v4 = vpop.eup %1510  ;;  %v524_v5 = vadd.f32 1e-06, %v522_v2 }
 0x1a4   : > { %v1513_v6 = vpop.eup %1512  ;;  %v441_v7 = vadd.f32 %v1158_v1, %v433_v3  ;;  %v426_v8 = vmul.f32 %v1511_v4, %v1998_v19 }
 0x1a5   : > { %v467_v9 = vmul.f32 %v1513_v6, %v1994_v13  ;;  %1522 = vrsqrt.f32 %v524_v5 }
 0x1a6   : > { %443 = vst [vmem:[#allocation2] sm:$0xff] %v441_v7  ;;  %v434_v10 = vmul.f32 %v1157_v60, %v426_v8 }
 0x1a7   : > { %v1515_v11 = vpop.eup %1514  ;;  %v469_v12 = vmul.f32 %v1157_v60, %v467_v9 }
 0x1a8   : > { %v1517_v14 = vpop.eup %1516  ;;  %v442_v15 = vadd.f32 %v1158_v1, %v434_v10  ;;  %v468_v16 = vmul.f32 %v1515_v11, %v2000_v20 }
 0x1a9   : > { %v471_v17 = vadd.f32 %v1158_v1, %v469_v12  ;;  %v497_v18 = vmul.f32 %v1517_v14, %v2006_v27 }
 0x1aa   : > { %444 = vst [vmem:[#allocation2 + $0x20] sm:$0xff] %v442_v15  ;;  %v470_v21 = vmul.f32 %v1157_v60, %v468_v16 }
 0x1ab   : > { %v1519_v22 = vpop.eup %1518  ;;  %473 = vst [vmem:[#allocation2 + $0x8] sm:$0xff] %v471_v17  ;;  %v499_v23 = vmul.f32 %v1157_v60, %v497_v18 }
 0x1ac   : > { %v1521_v19 = vpop.eup %1520  ;;  %v472_v24 = vadd.f32 %v1158_v1, %v470_v21  ;;  %v498_v13 = vmul.f32 %v1519_v22, %v2008_v28 }
 0x1ad   : > { %v501_v25 = vadd.f32 %v1158_v1, %v499_v23  ;;  %v527_v26 = vmul.f32 %v1521_v19, %v2014_v35 }
 0x1ae   : > { %474 = vst [vmem:[#allocation2 + $0x28] sm:$0xff] %v472_v24  ;;  %v500_v29 = vmul.f32 %v1157_v60, %v498_v13 }
 0x1af   : > { %v1523_v30 = vpop.eup %1522  ;;  %503 = vst [vmem:[#allocation2 + $0x10] sm:$0xff] %v501_v25  ;;  %v529_v20 = vmul.f32 %v1157_v60, %v527_v26 }
 0x1b0   : > { %v502_v31 = vadd.f32 %v1158_v1, %v500_v29  ;;  %v528_v27 = vmul.f32 %v1523_v30, %v2016_v36 }
 0x1b1   : > { %v531_v32 = vadd.f32 %v1158_v1, %v529_v20 }
 0x1b2   : > { %504 = vst [vmem:[#allocation2 + $0x30] sm:$0xff] %v502_v31  ;;  %v530_v33 = vmul.f32 %v1157_v60, %v528_v27 }
 0x1b3   : > { %533 = vst [vmem:[#allocation2 + $0x18] sm:$0xff] %v531_v32 }
 0x1b4   : > { %v532_v34 = vadd.f32 %v1158_v1, %v530_v33 }
 0x1b6   : > { %534 = vst [vmem:[#allocation2 + $0x38] sm:$0xff] %v532_v34 }
 0x1b7 PF: > { %v544_v28 = vld [vmem:[%s1961_s13 + $0x8] sm:$0xff]  ;;  %v546_v35 = vld [vmem:[%s1961_s13 + $0x18] sm:$0xff]  ;;  %v543_v36 = vld [vmem:[%s1961_s13] sm:$0xff] }
 0x1b8   : > { %v1210_v37 = vpack.c.bf16 %v546_v35, %v544_v28  ;;  %v545_v38 = vld [vmem:[%s1961_s13 + $0x10] sm:$0xff]  ;;  %v608_v39 = vld [vmem:[%s1961_s13 + $0x208] sm:$0xff]  ;;  %v610_v40 = vld [vmem:[%s1961_s13 + $0x218] sm:$0xff] }
 0x1b9   : > { %v1212_v41 = vpack.c.bf16 %v545_v38, %v543_v36  ;;  %v1274_v42 = vpack.c.bf16 %v610_v40, %v608_v39  ;;  %v607_v43 = vld [vmem:[%s1961_s13 + $0x200] sm:$0xff]  ;;  %v609_v44 = vld [vmem:[%s1961_s13 + $0x210] sm:$0xff]  ;;  %v548_v45 = vld [vmem:[%s1961_s13 + $0x28] sm:$0xff] }
 0x1ba   : > { %1211 = vmatprep.subr.bf16.mxu1 %v1210_v37  ;;  %v1276_v46 = vpack.c.bf16 %v609_v44, %v607_v43  ;;  %v550_v47 = vld [vmem:[%s1961_s13 + $0x38] sm:$0xff]  ;;  %v547_v48 = vld [vmem:[%s1961_s13 + $0x20] sm:$0xff]  ;;  %v549_v49 = vld [vmem:[%s1961_s13 + $0x30] sm:$0xff] }
 0x1bb   : > { %1213 = vmatpush1.bf16.msra.mxu1 %v1212_v41  ;;  %1275 = vmatprep.subr.bf16.mxu0 %v1274_v42  ;;  %v1214_v50 = vpack.c.bf16 %v550_v47, %v548_v45  ;;  %v1216_v51 = vpack.c.bf16 %v549_v49, %v547_v48  ;;  %v612_v52 = vld [vmem:[%s1961_s13 + $0x228] sm:$0xff]  ;;  %v614_v53 = vld [vmem:[%s1961_s13 + $0x238] sm:$0xff]  ;;  %v611_v54 = vld [vmem:[%s1961_s13 + $0x220] sm:$0xff] }
 0x1bc   : > { %1277 = vmatpush1.bf16.msra.mxu0 %v1276_v46  ;;  %v1278_v55 = vpack.c.bf16 %v614_v53, %v612_v52  ;;  %v613_v56 = vld [vmem:[%s1961_s13 + $0x230] sm:$0xff]  ;;  %v552_v57 = vld [vmem:[%s1961_s13 + $0x48] sm:$0xff]  ;;  %v554_v58 = vld [vmem:[%s1961_s13 + $0x58] sm:$0xff] }
 0x1bd   : > { %1215 = vmatprep.subr.bf16.mxu1 %v1214_v50  ;;  %v1280_v59 = vpack.c.bf16 %v613_v56, %v611_v54  ;;  %v1218_v60 = vpack.c.bf16 %v554_v58, %v552_v57  ;;  %v551_v61 = vld [vmem:[%s1961_s13 + $0x40] sm:$0xff]  ;;  %v553_v62 = vld [vmem:[%s1961_s13 + $0x50] sm:$0xff]  ;;  %v616_v63 = vld [vmem:[%s1961_s13 + $0x248] sm:$0xff] }
 0x1be   : > { %1279 = vmatprep.subr.bf16.mxu0 %v1278_v55  ;;  %v618_v0 = vld [vmem:[%s1961_s13 + $0x258] sm:$0xff]  ;;  %v615_v1 = vld [vmem:[%s1961_s13 + $0x240] sm:$0xff]  ;;  %v617_v2 = vld [vmem:[%s1961_s13 + $0x250] sm:$0xff]  ;;  %v1220_v3 = vpack.c.bf16 %v553_v62, %v551_v61 }
 0x1bf   : > { %1217 = vmatpush1.bf16.msra.mxu1 %v1216_v51  ;;  %v1282_v4 = vpack.c.bf16 %v618_v0, %v616_v63  ;;  %v556_v5 = vld [vmem:[%s1961_s13 + $0x68] sm:$0xff]  ;;  %v558_v6 = vld [vmem:[%s1961_s13 + $0x78] sm:$0xff]  ;;  %v555_v7 = vld [vmem:[%s1961_s13 + $0x60] sm:$0xff]  ;;  %v1284_v8 = vpack.c.bf16 %v617_v2, %v615_v1 }
 0x1c0   : > { %1281 = vmatpush1.bf16.msra.mxu0 %v1280_v59  ;;  %1219 = vmatprep.subr.bf16.mxu1 %v1218_v60  ;;  %v1222_v9 = vpack.c.bf16 %v558_v6, %v556_v5  ;;  %v557_v10 = vld [vmem:[%s1961_s13 + $0x70] sm:$0xff]  ;;  %v620_v11 = vld [vmem:[%s1961_s13 + $0x268] sm:$0xff]  ;;  %v622_v12 = vld [vmem:[%s1961_s13 + $0x278] sm:$0xff] }
 0x1c1   : > { %1283 = vmatprep.subr.bf16.mxu0 %v1282_v4  ;;  %v1286_v14 = vpack.c.bf16 %v622_v12, %v620_v11  ;;  %v619_v15 = vld [vmem:[%s1961_s13 + $0x260] sm:$0xff]  ;;  %v621_v16 = vld [vmem:[%s1961_s13 + $0x270] sm:$0xff]  ;;  %v560_v17 = vld [vmem:[%s1961_s13 + $0x88] sm:$0xff]  ;;  %v1224_v21 = vpack.c.bf16 %v557_v10, %v555_v7 }
 0x1c2   : > { %v562_v18 = vld [vmem:[%s1961_s13 + $0x98] sm:$0xff]  ;;  %v624_v22 = vld [vmem:[%s1961_s13 + $0x288] sm:$0xff]  ;;  %v1288_v19 = vpack.c.bf16 %v621_v16, %v619_v15  ;;  %v559_v13 = vld [vmem:[%s1961_s13 + $0x80] sm:$0xff] }
 0x1c3   : > { %1221 = vmatpush1.bf16.msra.mxu1 %v1220_v3  ;;  %v626_v23 = vld [vmem:[%s1961_s13 + $0x298] sm:$0xff]  ;;  %v1226_v24 = vpack.c.bf16 %v562_v18, %v560_v17  ;;  %v561_v25 = vld [vmem:[%s1961_s13 + $0x90] sm:$0xff]  ;;  %v623_v26 = vld [vmem:[%s1961_s13 + $0x280] sm:$0xff] }
 0x1c4   : > { %1285 = vmatpush1.bf16.msra.mxu0 %v1284_v8  ;;  %1223 = vmatprep.subr.bf16.mxu1 %v1222_v9  ;;  %v1290_v29 = vpack.c.bf16 %v626_v23, %v624_v22  ;;  %v625_v30 = vld [vmem:[%s1961_s13 + $0x290] sm:$0xff]  ;;  %v564_v20 = vld [vmem:[%s1961_s13 + $0xa8] sm:$0xff]  ;;  %v566_v31 = vld [vmem:[%s1961_s13 + $0xb8] sm:$0xff]  ;;  %v1228_v33 = vpack.c.bf16 %v561_v25, %v559_v13 }
 0x1c5   : > { %1287 = vmatprep.subr.bf16.mxu0 %v1286_v14  ;;  %v628_v27 = vld [vmem:[%s1961_s13 + $0x2a8] sm:$0xff]  ;;  %v630_v32 = vld [vmem:[%s1961_s13 + $0x2b8] sm:$0xff]  ;;  %v1292_v34 = vpack.c.bf16 %v625_v30, %v623_v26  ;;  %v1230_v28 = vpack.c.bf16 %v566_v31, %v564_v20  ;;  %v563_v35 = vld [vmem:[%s1961_s13 + $0xa0] sm:$0xff] }
 0x1c6   : > { %v565_v36 = vld [vmem:[%s1961_s13 + $0xb0] sm:$0xff]  ;;  %v627_v37 = vld [vmem:[%s1961_s13 + $0x2a0] sm:$0xff]  ;;  %v1294_v38 = vpack.c.bf16 %v630_v32, %v628_v27  ;;  %v568_v40 = vld [vmem:[%s1961_s13 + $0xc8] sm:$0xff] }
 0x1c7   : > { %1225 = vmatpush1.bf16.msra.mxu1 %v1224_v21  ;;  %v629_v39 = vld [vmem:[%s1961_s13 + $0x2b0] sm:$0xff]  ;;  %v570_v41 = vld [vmem:[%s1961_s13 + $0xd8] sm:$0xff]  ;;  %v632_v42 = vld [vmem:[%s1961_s13 + $0x2c8] sm:$0xff]  ;;  %v1232_v44 = vpack.c.bf16 %v565_v36, %v563_v35 }
 0x1c8   : > { %1289 = vmatpush1.bf16.msra.mxu0 %v1288_v19  ;;  %1227 = vmatprep.subr.bf16.mxu1 %v1226_v24  ;;  %v634_v43 = vld [vmem:[%s1961_s13 + $0x2d8] sm:$0xff]  ;;  %v1296_v45 = vpack.c.bf16 %v629_v39, %v627_v37  ;;  %v1234_v46 = vpack.c.bf16 %v570_v41, %v568_v40  ;;  %v567_v47 = vld [vmem:[%s1961_s13 + $0xc0] sm:$0xff]  ;;  %v569_v48 = vld [vmem:[%s1961_s13 + $0xd0] sm:$0xff] }
 0x1c9   : > { %1291 = vmatprep.subr.bf16.mxu0 %v1290_v29  ;;  %v631_v49 = vld [vmem:[%s1961_s13 + $0x2c0] sm:$0xff]  ;;  %v1298_v50 = vpack.c.bf16 %v634_v43, %v632_v42  ;;  %v633_v51 = vld [vmem:[%s1961_s13 + $0x2d0] sm:$0xff]  ;;  %v572_v52 = vld [vmem:[%s1961_s13 + $0xe8] sm:$0xff]  ;;  %v1236_v56 = vpack.c.bf16 %v569_v48, %v567_v47 }
 0x1ca   : > { %v574_v53 = vld [vmem:[%s1961_s13 + $0xf8] sm:$0xff]  ;;  %v636_v54 = vld [vmem:[%s1961_s13 + $0x2e8] sm:$0xff]  ;;  %v1300_v57 = vpack.c.bf16 %v633_v51, %v631_v49  ;;  %v571_v59 = vld [vmem:[%s1961_s13 + $0xe0] sm:$0xff] }
 0x1cb   : > { %1229 = vmatpush1.bf16.msra.mxu1 %v1228_v33  ;;  %v638_v55 = vld [vmem:[%s1961_s13 + $0x2f8] sm:$0xff]  ;;  %v1238_v58 = vpack.c.bf16 %v574_v53, %v572_v52  ;;  %v573_v60 = vld [vmem:[%s1961_s13 + $0xf0] sm:$0xff]  ;;  %v635_v61 = vld [vmem:[%s1961_s13 + $0x2e0] sm:$0xff] }
 0x1cc   : > { %1293 = vmatpush1.bf16.msra.mxu0 %v1292_v34  ;;  %1231 = vmatprep.subr.bf16.mxu1 %v1230_v28  ;;  %v1302_v62 = vpack.c.bf16 %v638_v55, %v636_v54  ;;  %v637_v63 = vld [vmem:[%s1961_s13 + $0x2f0] sm:$0xff]  ;;  %v576_v0 = vld [vmem:[%s1961_s13 + $0x108] sm:$0xff]  ;;  %v578_v1 = vld [vmem:[%s1961_s13 + $0x118] sm:$0xff]  ;;  %v1240_v4 = vpack.c.bf16 %v573_v60, %v571_v59 }
 0x1cd   : > { %1295 = vmatprep.subr.bf16.mxu0 %v1294_v38  ;;  %v640_v2 = vld [vmem:[%s1961_s13 + $0x308] sm:$0xff]  ;;  %v642_v3 = vld [vmem:[%s1961_s13 + $0x318] sm:$0xff]  ;;  %v1304_v5 = vpack.c.bf16 %v637_v63, %v635_v61  ;;  %v1242_v6 = vpack.c.bf16 %v578_v1, %v576_v0  ;;  %v575_v7 = vld [vmem:[%s1961_s13 + $0x100] sm:$0xff] }
 0x1ce   : > { %v577_v8 = vld [vmem:[%s1961_s13 + $0x110] sm:$0xff]  ;;  %v639_v9 = vld [vmem:[%s1961_s13 + $0x300] sm:$0xff]  ;;  %v1306_v10 = vpack.c.bf16 %v642_v3, %v640_v2  ;;  %v580_v12 = vld [vmem:[%s1961_s13 + $0x128] sm:$0xff] }
 0x1cf   : > { %1233 = vmatpush1.bf16.msra.mxu1 %v1232_v44  ;;  %v641_v11 = vld [vmem:[%s1961_s13 + $0x310] sm:$0xff]  ;;  %v582_v14 = vld [vmem:[%s1961_s13 + $0x138] sm:$0xff]  ;;  %v644_v15 = vld [vmem:[%s1961_s13 + $0x328] sm:$0xff]  ;;  %v1244_v17 = vpack.c.bf16 %v577_v8, %v575_v7 }
 0x1d0   : > { %1297 = vmatpush1.bf16.msra.mxu0 %v1296_v45  ;;  %1235 = vmatprep.subr.bf16.mxu1 %v1234_v46  ;;  %v646_v16 = vld [vmem:[%s1961_s13 + $0x338] sm:$0xff]  ;;  %v1308_v18 = vpack.c.bf16 %v641_v11, %v639_v9  ;;  %v1246_v21 = vpack.c.bf16 %v582_v14, %v580_v12  ;;  %v579_v22 = vld [vmem:[%s1961_s13 + $0x120] sm:$0xff]  ;;  %v581_v23 = vld [vmem:[%s1961_s13 + $0x130] sm:$0xff] }
 0x1d1   : > { %1299 = vmatprep.subr.bf16.mxu0 %v1298_v50  ;;  %v643_v19 = vld [vmem:[%s1961_s13 + $0x320] sm:$0xff]  ;;  %v1310_v24 = vpack.c.bf16 %v646_v16, %v644_v15  ;;  %v645_v13 = vld [vmem:[%s1961_s13 + $0x330] sm:$0xff]  ;;  %v584_v25 = vld [vmem:[%s1961_s13 + $0x148] sm:$0xff]  ;;  %v1248_v20 = vpack.c.bf16 %v581_v23, %v579_v22 }
 0x1d2   : > { %v586_v26 = vld [vmem:[%s1961_s13 + $0x158] sm:$0xff]  ;;  %v648_v29 = vld [vmem:[%s1961_s13 + $0x348] sm:$0xff]  ;;  %v1312_v31 = vpack.c.bf16 %v645_v13, %v643_v19  ;;  %v583_v32 = vld [vmem:[%s1961_s13 + $0x140] sm:$0xff] }
 0x1d3   : > { %1237 = vmatpush1.bf16.msra.mxu1 %v1236_v56  ;;  %v650_v30 = vld [vmem:[%s1961_s13 + $0x358] sm:$0xff]  ;;  %v1250_v27 = vpack.c.bf16 %v586_v26, %v584_v25  ;;  %v585_v33 = vld [vmem:[%s1961_s13 + $0x150] sm:$0xff]  ;;  %v647_v34 = vld [vmem:[%s1961_s13 + $0x340] sm:$0xff] }
 0x1d4   : > { %1301 = vmatpush1.bf16.msra.mxu0 %v1300_v57  ;;  %1239 = vmatprep.subr.bf16.mxu1 %v1238_v58  ;;  %v1314_v28 = vpack.c.bf16 %v650_v30, %v648_v29  ;;  %v649_v35 = vld [vmem:[%s1961_s13 + $0x350] sm:$0xff]  ;;  %v588_v36 = vld [vmem:[%s1961_s13 + $0x168] sm:$0xff]  ;;  %v590_v37 = vld [vmem:[%s1961_s13 + $0x178] sm:$0xff]  ;;  %v1252_v40 = vpack.c.bf16 %v585_v33, %v583_v32 }
 0x1d5   : > { %1303 = vmatprep.subr.bf16.mxu0 %v1302_v62  ;;  %v652_v38 = vld [vmem:[%s1961_s13 + $0x368] sm:$0xff]  ;;  %v654_v39 = vld [vmem:[%s1961_s13 + $0x378] sm:$0xff]  ;;  %v587_v41 = vld [vmem:[%s1961_s13 + $0x160] sm:$0xff]  ;;  %v1316_v42 = vpack.c.bf16 %v649_v35, %v647_v34  ;;  %v1254_v43 = vpack.c.bf16 %v590_v37, %v588_v36 }
 0x1d6   : > { %v589_v44 = vld [vmem:[%s1961_s13 + $0x170] sm:$0xff]  ;;  %v651_v45 = vld [vmem:[%s1961_s13 + $0x360] sm:$0xff]  ;;  %v1318_v47 = vpack.c.bf16 %v654_v39, %v652_v38  ;;  %v592_v48 = vld [vmem:[%s1961_s13 + $0x188] sm:$0xff] }
 0x1d7   : > { %1241 = vmatpush1.bf16.msra.mxu1 %v1240_v4  ;;  %v653_v46 = vld [vmem:[%s1961_s13 + $0x370] sm:$0xff]  ;;  %v594_v49 = vld [vmem:[%s1961_s13 + $0x198] sm:$0xff]  ;;  %v656_v51 = vld [vmem:[%s1961_s13 + $0x388] sm:$0xff]  ;;  %v1256_v54 = vpack.c.bf16 %v589_v44, %v587_v41 }
 0x1d8   : > { %1305 = vmatpush1.bf16.msra.mxu0 %v1304_v5  ;;  %1243 = vmatprep.subr.bf16.mxu1 %v1242_v6  ;;  %v536_v50 = vld [vmem:[#allocation2 + $0x8] sm:$0xff]  ;;  %v538_v53 = vld [vmem:[#allocation2 + $0x18] sm:$0xff]  ;;  %v1320_v55 = vpack.c.bf16 %v653_v46, %v651_v45  ;;  %v1258_v56 = vpack.c.bf16 %v594_v49, %v592_v48  ;;  %v591_v57 = vld [vmem:[%s1961_s13 + $0x180] sm:$0xff] }
 0x1d9   : > { %1307 = vmatprep.subr.bf16.mxu0 %v1306_v10  ;;  %v658_v52 = vld [vmem:[%s1961_s13 + $0x398] sm:$0xff]  ;;  %747 = vmatprep.mubr.f32.mxu1 %v536_v50  ;;  %v593_v58 = vld [vmem:[%s1961_s13 + $0x190] sm:$0xff]  ;;  %v655_v59 = vld [vmem:[%s1961_s13 + $0x380] sm:$0xff] }
 0x1da   : > { %824 = vmatprep.mubr.f32.mxu0 %v538_v53  ;;  %v1322_v60 = vpack.c.bf16 %v658_v52, %v656_v51  ;;  %v657_v61 = vld [vmem:[%s1961_s13 + $0x390] sm:$0xff]  ;;  %v596_v62 = vld [vmem:[%s1961_s13 + $0x1a8] sm:$0xff]  ;;  %v598_v63 = vld [vmem:[%s1961_s13 + $0x1b8] sm:$0xff]  ;;  %v1260_v2 = vpack.c.bf16 %v593_v58, %v591_v57 }
 0x1db   : > { %1245 = vmatpush1.bf16.msra.mxu1 %v1244_v17  ;;  %v660_v0 = vld [vmem:[%s1961_s13 + $0x3a8] sm:$0xff]  ;;  %v662_v1 = vld [vmem:[%s1961_s13 + $0x3b8] sm:$0xff]  ;;  %v1324_v3 = vpack.c.bf16 %v657_v61, %v655_v59  ;;  %v1262_v4 = vpack.c.bf16 %v598_v63, %v596_v62  ;;  %v595_v5 = vld [vmem:[%s1961_s13 + $0x1a0] sm:$0xff] }
 0x1dc   : > { %1309 = vmatpush1.bf16.msra.mxu0 %v1308_v18  ;;  %1247 = vmatprep.subr.bf16.mxu1 %v1246_v21  ;;  %v597_v6 = vld [vmem:[%s1961_s13 + $0x1b0] sm:$0xff]  ;;  %v659_v7 = vld [vmem:[%s1961_s13 + $0x3a0] sm:$0xff]  ;;  %v1326_v8 = vpack.c.bf16 %v662_v1, %v660_v0  ;;  %v600_v10 = vld [vmem:[%s1961_s13 + $0x1c8] sm:$0xff] }
 0x1dd   : > { %1311 = vmatprep.subr.bf16.mxu0 %v1310_v24  ;;  %v661_v9 = vld [vmem:[%s1961_s13 + $0x3b0] sm:$0xff]  ;;  %v602_v11 = vld [vmem:[%s1961_s13 + $0x1d8] sm:$0xff]  ;;  %v664_v12 = vld [vmem:[%s1961_s13 + $0x3c8] sm:$0xff]  ;;  %v1264_v15 = vpack.c.bf16 %v597_v6, %v595_v5 }
 0x1de   : > { %v666_v14 = vld [vmem:[%s1961_s13 + $0x3d8] sm:$0xff]  ;;  %v1328_v16 = vpack.c.bf16 %v661_v9, %v659_v7  ;;  %v1266_v17 = vpack.c.bf16 %v602_v11, %v600_v10  ;;  %v599_v18 = vld [vmem:[%s1961_s13 + $0x1c0] sm:$0xff]  ;;  %v601_v21 = vld [vmem:[%s1961_s13 + $0x1d0] sm:$0xff] }
 0x1df   : > { %1249 = vmatpush1.bf16.msra.mxu1 %v1248_v20  ;;  %v663_v22 = vld [vmem:[%s1961_s13 + $0x3c0] sm:$0xff]  ;;  %v1330_v23 = vpack.c.bf16 %v666_v14, %v664_v12  ;;  %v665_v19 = vld [vmem:[%s1961_s13 + $0x3d0] sm:$0xff]  ;;  %v604_v24 = vld [vmem:[%s1961_s13 + $0x1e8] sm:$0xff]  ;;  %v1268_v29 = vpack.c.bf16 %v601_v21, %v599_v18 }
 0x1e0   : > { %1313 = vmatpush1.bf16.msra.mxu0 %v1312_v31  ;;  %1251 = vmatprep.subr.bf16.mxu1 %v1250_v27  ;;  %v606_v13 = vld [vmem:[%s1961_s13 + $0x1f8] sm:$0xff]  ;;  %v668_v25 = vld [vmem:[%s1961_s13 + $0x3e8] sm:$0xff]  ;;  %v1332_v30 = vpack.c.bf16 %v665_v19, %v663_v22  ;;  %v603_v31 = vld [vmem:[%s1961_s13 + $0x1e0] sm:$0xff] }
 0x1e1   : > { %1315 = vmatprep.subr.bf16.mxu0 %v1314_v28  ;;  %v670_v26 = vld [vmem:[%s1961_s13 + $0x3f8] sm:$0xff]  ;;  %v1270_v20 = vpack.c.bf16 %v606_v13, %v604_v24  ;;  %v605_v27 = vld [vmem:[%s1961_s13 + $0x1f0] sm:$0xff]  ;;  %v667_v33 = vld [vmem:[%s1961_s13 + $0x3e0] sm:$0xff] }
 0x1e2   : > { %v1334_v32 = vpack.c.bf16 %v670_v26, %v668_v25  ;;  %v669_v34 = vld [vmem:[%s1961_s13 + $0x3f0] sm:$0xff]  ;;  %v873_v28 = vld [vmem:[%s1967_s16 + $0x80] sm:$0xff]  ;;  %v874_v35 = vld [vmem:[%s1967_s16 + $0x88] sm:$0xff]  ;;  %v1272_v36 = vpack.c.bf16 %v605_v27, %v603_v31 }
 0x1e3   : > { %1253 = vmatpush1.bf16.msra.mxu1 %v1252_v40  ;;  %v1336_v37 = vpack.c.bf16 %v669_v34, %v667_v33  ;;  %v1338_v38 = vpack.c.bf16 %v874_v35, %v873_v28  ;;  %v857_v39 = vld [vmem:[%s1967_s16] sm:$0xff]  ;;  %v858_v40 = vld [vmem:[%s1967_s16 + $0x8] sm:$0xff]  ;;  %v875_v41 = vld [vmem:[%s1967_s16 + $0x90] sm:$0xff] }
 0x1e4   : > { %1317 = vmatpush1.bf16.msra.mxu0 %v1316_v42  ;;  %1255 = vmatprep.subr.bf16.mxu1 %v1254_v43  ;;  %v876_v42 = vld [vmem:[%s1967_s16 + $0x98] sm:$0xff]  ;;  %v535_v43 = vld [vmem:[#allocation2] sm:$0xff]  ;;  %v537_v44 = vld [vmem:[#allocation2 + $0x10] sm:$0xff]  ;;  %v1340_v46 = vpack.c.bf16 %v858_v40, %v857_v39 }
 0x1e5   : > { %1319 = vmatprep.subr.bf16.mxu0 %v1318_v47  ;;  %v540_v45 = vld [vmem:[#allocation2 + $0x28] sm:$0xff]  ;;  %v542_v47 = vld [vmem:[#allocation2 + $0x38] sm:$0xff]  ;;  %v1342_v48 = vpack.c.bf16 %v876_v42, %v875_v41  ;;  %v859_v49 = vld [vmem:[%s1967_s16 + $0x10] sm:$0xff] }
 0x1e6   : > { %v860_v50 = vld [vmem:[%s1967_s16 + $0x18] sm:$0xff]  ;;  %v539_v51 = vld [vmem:[#allocation2 + $0x20] sm:$0xff]  ;;  %v541_v52 = vld [vmem:[#allocation2 + $0x30] sm:$0xff] }
 0x1e7   : > { %1257 = vmatpush1.bf16.msra.mxu1 %v1256_v54  ;;  %v1344_v53 = vpack.c.bf16 %v860_v50, %v859_v49  ;;  %v877_v54 = vld [vmem:[%s1967_s16 + $0xa0] sm:$0xff]  ;;  %v862_v58 = vld [vmem:[%s1967_s16 + $0x28] sm:$0xff]  ;;  %v880_v61 = vld [vmem:[%s1967_s16 + $0xb8] sm:$0xff] }
 0x1e8   : > { %1321 = vmatpush1.bf16.msra.mxu0 %v1320_v55  ;;  %1259 = vmatprep.subr.bf16.mxu1 %v1258_v56  ;;  %v878_v55 = vld [vmem:[%s1967_s16 + $0xa8] sm:$0xff]  ;;  %v861_v57 = vld [vmem:[%s1967_s16 + $0x20] sm:$0xff]  ;;  %v863_v63 = vld [vmem:[%s1967_s16 + $0x30] sm:$0xff] }
 0x1e9   : > { %1323 = vmatprep.subr.bf16.mxu0 %v1322_v60  ;;  %v1346_v56 = vpack.c.bf16 %v878_v55, %v877_v54  ;;  %v1348_v59 = vpack.c.bf16 %v862_v58, %v861_v57  ;;  %v879_v60 = vld [vmem:[%s1967_s16 + $0xb0] sm:$0xff]  ;;  %v864_v0 = vld [vmem:[%s1967_s16 + $0x38] sm:$0xff]  ;;  %v865_v5 = vld [vmem:[%s1967_s16 + $0x40] sm:$0xff] }
 0x1ea   : > { %v1350_v62 = vpack.c.bf16 %v880_v61, %v879_v60  ;;  %v1352_v1 = vpack.c.bf16 %v864_v0, %v863_v63  ;;  %v866_v6 = vld [vmem:[%s1967_s16 + $0x48] sm:$0xff]  ;;  %v884_v9 = vld [vmem:[%s1967_s16 + $0xd8] sm:$0xff]  ;;  %v867_v11 = vld [vmem:[%s1967_s16 + $0x50] sm:$0xff] }
 0x1eb   : > { %1261 = vmatpush1.bf16.msra.mxu1 %v1260_v2  ;;  %v881_v2 = vld [vmem:[%s1967_s16 + $0xc0] sm:$0xff]  ;;  %v1356_v7 = vpack.c.bf16 %v866_v6, %v865_v5  ;;  %v868_v12 = vld [vmem:[%s1967_s16 + $0x58] sm:$0xff]  ;;  %v870_v21 = vld [vmem:[%s1967_s16 + $0x68] sm:$0xff] }
 0x1ec   : > { %1325 = vmatpush1.bf16.msra.mxu0 %v1324_v3  ;;  %1263 = vmatprep.subr.bf16.mxu1 %v1262_v4  ;;  %v882_v3 = vld [vmem:[%s1967_s16 + $0xc8] sm:$0xff]  ;;  %v1360_v14 = vpack.c.bf16 %v868_v12, %v867_v11  ;;  %v869_v18 = vld [vmem:[%s1967_s16 + $0x60] sm:$0xff]  ;;  %v888_v19 = vld [vmem:[%s1967_s16 + $0xf8] sm:$0xff] }
 0x1ed   : > { %1327 = vmatprep.subr.bf16.mxu0 %v1326_v8  ;;  %v1354_v4 = vpack.c.bf16 %v882_v3, %v881_v2  ;;  %v883_v8 = vld [vmem:[%s1967_s16 + $0xd0] sm:$0xff]  ;;  %v1364_v22 = vpack.c.bf16 %v870_v21, %v869_v18  ;;  %v872_v25 = vld [vmem:[%s1967_s16 + $0x78] sm:$0xff] }
 0x1ee   : > { %v1358_v10 = vpack.c.bf16 %v884_v9, %v883_v8  ;;  %v871_v13 = vld [vmem:[%s1967_s16 + $0x70] sm:$0xff] }
 0x1ef   : > { %1265 = vmatpush1.bf16.msra.mxu1 %v1264_v15  ;;  %v885_v15 = vld [vmem:[%s1967_s16 + $0xe0] sm:$0xff]  ;;  %v1368_v26 = vpack.c.bf16 %v872_v25, %v871_v13  ;;  %v671_v31 = vld [vmem:[%s392_s21] sm:$0x3] }
 0x1f0   : > { %1329 = vmatpush1.bf16.msra.mxu0 %v1328_v16  ;;  %1267 = vmatprep.subr.bf16.mxu1 %v1266_v17  ;;  %v886_v16 = vld [vmem:[%s1967_s16 + $0xe8] sm:$0xff]  ;;  %v1160_v11 = vld [vmem:[%s2290_s6] ss:$0 sm:$0xff] (!%p1156_p2) }
 0x1f1   : > { %1331 = vmatprep.subr.bf16.mxu0 %v1330_v23  ;;  %v1362_v17 = vpack.c.bf16 %v886_v16, %v885_v15  ;;  %v887_v23 = vld [vmem:[%s1967_s16 + $0xf0] sm:$0xff] }
 0x1f2   : > { %v1366_v24 = vpack.c.bf16 %v888_v19, %v887_v23 }
 0x1f3   : > { %1269 = vmatpush1.bf16.msra.mxu1 %v1268_v29  ;;  %v673_v29 = vlaneseq }
 0x1f4   : > { %1333 = vmatpush1.bf16.msra.mxu0 %v1332_v30  ;;  %1271 = vmatprep.subr.bf16.mxu1 %v1270_v20 }
 0x1f5   : > { %1335 = vmatprep.subr.bf16.mxu0 %v1334_v32  ;;  %v674_v30 = vshrl.u32 %v673_v29, 7 }
 0x1f7   : > { %1273 = vmatpush1.bf16.msra.mxu1 %v1272_v36  ;;  %v675_v20 = vsub.s32 0, %v674_v30  ;;  %v679_v27 = vsub.s32 1, %v674_v30 }
 0x1f8   : > { %1337 = vmatpush1.bf16.msra.mxu0 %v1336_v37  ;;  %1370 = vmatprep.subr.bf16.mxu1 %v1338_v38 }
 0x1f9   : > { %1339 = vmatprep.subr.bf16.mxu0 %v1338_v38  ;;  %v676_v32 = vrot.slane %v671_v31, %v675_v20  ;;  %v680_v33 = vrot.slane %v671_v31, %v679_v27 }
 0x1fa   : > { %748 = vmatmul.mubr.f32.vlgmr.msra.gmra.mrb[0].mxu1 %v535_v43 }
 0x1fb   : > { %825 = vmatmul.mubr.f32.vlgmr.msra.gmra.mrb[0].mxu0 %v537_v44  ;;  %753 = vmatprep.mubr.f32.mxu1 %v540_v45 }
 0x1fc   : > { %830 = vmatprep.mubr.f32.mxu0 %v542_v47  ;;  %1341 = vmatpush3.bf16.msra.mxu0 %v1340_v46 }
 0x1fd   : > { %1343 = vmatprep.subr.bf16.mxu0 %v1342_v48  ;;  %1378 = vmatpush3.bf16.msra.mxu1 %v1340_v46 }
 0x1fe   : > { %754 = vmatmul.mubr.f32.gmra.mrb[2].mxu1 %v539_v51  ;;  %1371 = vmatprep.subr.bf16.mxu1 %v1342_v48 }
 0x1ff   : > { %831 = vmatmul.mubr.f32.gmra.mrb[2].mxu0 %v541_v52 }
 0x200   : > { %1345 = vmatpush3.bf16.msra.mxu0 %v1344_v53 }
 0x201   : > { %1379 = vmatpush3.bf16.msra.mxu1 %v1344_v53  ;;  %1347 = vmatprep.subr.bf16.mxu0 %v1346_v56 }
 0x202   : > { %1372 = vmatprep.subr.bf16.mxu1 %v1346_v56 }
 0x204   : > { %1349 = vmatpush3.bf16.msra.mxu0 %v1348_v59 }
 0x205   : > { %1380 = vmatpush3.bf16.msra.mxu1 %v1348_v59  ;;  %1351 = vmatprep.subr.bf16.mxu0 %v1350_v62 }
 0x206   : > { %1373 = vmatprep.subr.bf16.mxu1 %v1350_v62 }
 0x208   : > { %1353 = vmatpush3.bf16.msra.mxu0 %v1352_v1 }
 0x209   : > { %1381 = vmatpush3.bf16.msra.mxu1 %v1352_v1  ;;  %1355 = vmatprep.subr.bf16.mxu0 %v1354_v4 }
 0x20a   : > { %1374 = vmatprep.subr.bf16.mxu1 %v1354_v4 }
 0x20c   : > { %1357 = vmatpush3.bf16.msra.mxu0 %v1356_v7 }
 0x20d   : > { %1382 = vmatpush3.bf16.msra.mxu1 %v1356_v7  ;;  %1359 = vmatprep.subr.bf16.mxu0 %v1358_v10 }
 0x20e   : > { %1375 = vmatprep.subr.bf16.mxu1 %v1358_v10 }
 0x210   : > { %1361 = vmatpush3.bf16.msra.mxu0 %v1360_v14 }
 0x211   : > { %1383 = vmatpush3.bf16.msra.mxu1 %v1360_v14  ;;  %1363 = vmatprep.subr.bf16.mxu0 %v1362_v17 }
 0x212   : > { %1376 = vmatprep.subr.bf16.mxu1 %v1362_v17 }
 0x214   : > { %1365 = vmatpush3.bf16.msra.mxu0 %v1364_v22 }
 0x215   : > { %1384 = vmatpush3.bf16.msra.mxu1 %v1364_v22  ;;  %1367 = vmatprep.subr.bf16.mxu0 %v1366_v24 }
 0x216   : > { %1377 = vmatprep.subr.bf16.mxu1 %v1366_v24 }
 0x218   : > { %1369 = vmatpush3.bf16.msra.mxu0 %v1368_v26 }
 0x219   : > { %1385 = vmatpush3.bf16.msra.mxu1 %v1368_v26 }
 0x2cd   : > { %v749_v34 = vpop.f32.mrb[0].mxu1 }
 0x2ce   : > { %v750_v28 = vadd.f32 %v749_v34, %v676_v32  ;;  %v751_v35 = vpop.f32.mrb[1].mxu1  ;;  %v826_v36 = vpop.f32.mrb[0].mxu0 }
 0x2cf   : > { %v752_v37 = vadd.f32 %v751_v35, %v680_v33  ;;  %v828_v38 = vpop.f32.mrb[1].mxu0 }
 0x2d0   : > { %v827_v39 = vadd.f32 %v826_v36, %v750_v28 }
 0x2d1   : > { %v829_v40 = vadd.f32 %v828_v38, %v752_v37  ;;  %v755_v41 = vpop.f32.mrb[2].mxu1 }
 0x2d2   : > { %v841_v42 = vmul.f32 0.70710677, %v827_v39  ;;  %v756_v43 = vadd.f32 %v755_v41, %v676_v32  ;;  %v757_v44 = vpop.f32.mrb[3].mxu1  ;;  %v832_v45 = vpop.f32.mrb[2].mxu0  ;;  %v837_v58 = vmul.f32 0.5, %v827_v39 }
 0x2d3   : > { %v842_v46 = vmul.f32 0.70710677, %v829_v40  ;;  %v758_v47 = vadd.f32 %v757_v44, %v680_v33  ;;  %v834_v48 = vpop.f32.mrb[3].mxu0  ;;  %v838_v56 = vmul.f32 0.5, %v829_v40 }
 0x2d4   : > { %1524 = verf.f32 %v841_v42  ;;  %v833_v49 = vadd.f32 %v832_v45, %v756_v43 }
 0x2d5   : > { %1526 = verf.f32 %v842_v46  ;;  %v835_v50 = vadd.f32 %v834_v48, %v758_v47 }
 0x2d6   : > { %v843_v51 = vmul.f32 0.70710677, %v833_v49  ;;  %v839_v2 = vmul.f32 0.5, %v833_v49 }
 0x2d7   : > { %v844_v52 = vmul.f32 0.70710677, %v835_v50  ;;  %v840_v0 = vmul.f32 0.5, %v835_v50 }
 0x2d8   : > { %1528 = verf.f32 %v843_v51 }
 0x2d9   : > { %1530 = verf.f32 %v844_v52 }
 0x2de   : > { %v1525_v53 = vpop.eup %1524 }
 0x2df   : > { %v1527_v54 = vpop.eup %1526  ;;  %v849_v55 = vadd.f32 1.0, %v1525_v53 }
 0x2e0   : > { %v850_v57 = vadd.f32 1.0, %v1527_v54 }
 0x2e1   : > { %v853_v62 = vmul.f32 %v849_v55, %v837_v58 }
 0x2e2   : > { %v1529_v59 = vpop.eup %1528  ;;  %v854_v60 = vmul.f32 %v850_v57, %v838_v56 }
 0x2e3   : > { %v1531_v61 = vpop.eup %1530  ;;  %v851_v63 = vadd.f32 1.0, %v1529_v59 }
 0x2e4   : > { %v852_v1 = vadd.f32 1.0, %v1531_v61  ;;  %953 = vmatprep.mubr.f32.mxu0 %v854_v60 }
 0x2e5   : > { %954 = vmatmul.mubr.f32.vlgmr.msra.gmra.mrb[4].mxu0 %v853_v62  ;;  %v855_v4 = vmul.f32 %v851_v63, %v839_v2 }
 0x2e6   : > { %v856_v3 = vmul.f32 %v852_v1, %v840_v0 }
 0x2e8   : > { %958 = vmatprep.mubr.f32.mxu1 %v856_v3 }
 0x2e9   : > { %959 = vmatmul.mubr.f32.vlgmr.msra.gmra.mrb[4].mxu1 %v855_v4 }
 0x3b8   : > { %v1204_v5 = vpop.f32.mrb[4].mxu0  ;;  %966 = sbr.rel (%p1156_p2) target bundleno = 963 (0x3c3), region = 64 }
 0x3b9   : > { %v1205_v6 = vpop.f32.mrb[5].mxu0 }
 0x3ba   : > { %v1206_v7 = vadd.f32 %v1205_v6, %v1204_v5 }
 0x3bc   : > { %v1207_v8 = vpop.f32.mrb[4].mxu1  ;;  %v974_v12 = vadd.f32 (!%p1156_p2), %v1206_v7, %v1160_v11 }
 0x3bd   : > { %v1208_v9 = vpop.f32.mrb[5].mxu1 }
 0x3be   : > { %v1209_v10 = vadd.f32 %v1208_v9, %v1207_v8  ;;  %976 = vst [vmem:[#allocation3] sm:$0xff] (!%p1156_p2), %v974_v12 }
 0x3c0   : > { %v975_v14 = vadd.f32 %v1209_v10, %v1160_v11 }
 0x3c2   : > { %977 = vst [vmem:[#allocation3 + $0x8] sm:$0xff] %v975_v14 }
 0x3c3 PF: > { %p1161_p1 = scmp.le.s32.totalorder %s1702_s30, 0 }
 0x3c5   : > { %981 = sbr.rel (%p1161_p1) target bundleno = 973 (0x3cd), region = 68 }
 0x3c9   : > { %v982_v15 = vld [vmem:[#allocation3] sm:$0xff] (!%p1161_p1)  ;;  %v983_v16 = vld [vmem:[#allocation3 + $0x8] sm:$0xff] (!%p1161_p1) }
 0x3ca   : > { %v984_v17 = vadd.f32 (!%p1161_p1), %v1206_v7, %v982_v15  ;;  %v985_v18 = vadd.f32 (!%p1161_p1), %v1209_v10, %v983_v16 }
 0x3cc   : > { %986 = vst [vmem:[#allocation3] sm:$0xff] %v984_v17  ;;  %987 = vst [vmem:[#allocation3 + $0x8] sm:$0xff] %v985_v18 }
 0x3cd PF: > { %p1162_p11 = scmp.ne.s32.totalorder %s1702_s30, 1 }
 0x3cf   : > { %991 = sbr.rel (%p1162_p11) target bundleno = 982 (0x3d6), region = 72 }
 0x3d3   : > { %v992_v21 = vld [vmem:[#allocation3] sm:$0xff] (!%p1162_p11)  ;;  %v993_v22 = vld [vmem:[#allocation3 + $0x8] sm:$0xff] (!%p1162_p11) }
 0x3d4   : > { %994 = vst [vmem:[%s1987_s3] sm:$0xff] (!%p1162_p11), %v992_v21  ;;  %995 = vst [vmem:[%s1987_s3 + $0x8] sm:$0xff] (!%p1162_p11), %v993_v22 }
 0x3d6 PF: > { %s1171_s15 = sshll.u32 %s1706_s8, 8  ;;  %s1010_s20 = sshll.u32 %s1987_s3, 4  ;;  %s2219_s20 = int_to_ptr.vmem [resolvable:$true] %s1010_s20 }
 0x3d7   : > { %s2216_s14 = scalar_lea.hbm %s2291_s7, %s1171_s15  ;;  %s2223_s30 = scalar_lea.sflag [#allocation6], %s378_s24 }
 0x3d8   : > { %s1592_s12 = scalar_lea.vmem %s2219_s20, 256  ;;  %p2321_p5 = scmp.ne.s32.totalorder %s2312_s27, 0 }
 0x3d9   : > { %p1593_p13 = scmp.ne.s32.totalorder %s2219_s20, %s1592_s12  ;;  %s1727_s8 = smov [#allocation9]  }
 0x3da   : > { %s1596_s21 = sshll.u32 %s1727_s8, 4  ;;  %s1597_s21 = int_to_ptr.vmem [resolvable:$false] %s1596_s21 }
 0x3db   : > { %p1594_p12 = pnand %p1593_p13, %p2321_p5  ;;  %s1598_s23 = scalar_lea.vmem %s1597_s21, 512 }
 0x3dc   : > { %p1599_p0 = scmp.lt.s32.totalorder %s2219_s20, %s1597_s21  ;;  %p1600_p6 = scmp.lt.s32.totalorder %s1598_s23, %s1592_s12 }
 0x3dd   : > { %p1595_p10 = pneg %p1594_p12 }
 0x3de   : > { %p1601_p9 = por %p1600_p6, %p1599_p0 }
 0x3e0   : > { %p1602_p3 = pnand %p1601_p9, %p1595_p10 }
 0x3e2   : > { %1605 = shalt.err (!%p1602_p3)
}
 0x3e3   : > { %s1606_s24 = scalar_lea.hbm %s2216_s14, 256  ;;  %s1610_s19 = scalar_lea.hbm %s2291_s7, 512 }
 0x3e4   : > { %p1607_p8 = scmp.ne.s32.totalorder %s2216_s14, %s1606_s24  ;;  %p1611_p2 = scmp.lt.u32.totalorder %s2216_s14, %s2291_s7 }
 0x3e5   : > { %p1612_p1 = scmp.lt.u32.totalorder %s1610_s19, %s1606_s24  ;;  %p1614_p13 = scmp.lt.u32.totalorder %s1606_s24, %s2216_s14 }
 0x3e6   : > { %p1608_p4 = pnand %p1607_p8, %p2321_p5 }
 0x3e7   : > { %p1613_p11 = por %p1612_p1, %p1611_p2 }
 0x3e8   : > { %p1609_p7 = pneg %p1608_p4 }
 0x3e9   : > { %p1615_p12 = por %p1614_p13, %p1613_p11 }
 0x3eb   : > { %p1616_p10 = pnand %p1615_p12, %p1609_p7 }
 0x3ed   : > { %1619 = shalt.err (!%p1616_p10)
}
 0x3ee   : > { %s1728_s22 = smov 128   ;;  %s1729_s16 = smov 8  }
 0x3ef   : > { %1398 = dma.vmem_to_hbm [thread:$0]  (%p2321_p5), %s2219_s20, 256, %s2216_s14, %s2223_s30, %s1728_s22, %s1728_s22, %s1729_s16  }
 0x3f0 PF: > { %s2322_s10 = sld [smem:[#allocation13_spill]]  ;;  %s2323_s15 = sld [smem:[#allocation21_spill]] }
 0x3f1   : > { %p1412_p0 = scmp.ge.s32.totalorder %s1718_s11, 2 }
 0x3f6   : > { %s1025_s29 = sand.u32 1, %s2322_s10   ;;  %p2324_p6 = scmp.ne.s32.totalorder %s2323_s15, 0 }
 0x3f7   : > { %s1026_s18 = scalar_lea.sflag [#allocation6], %s1025_s29 }
 0x3f8   : > { %p1408_p9 = pnand %p1412_p0, %p2324_p6 }
 0x3fa   : > { %1673 = dma.done.wait (!%p1408_p9), %s1026_s18, 256  }
 0x3fb   : > { %1675 = vsyncadd (!%p1408_p9), %s1026_s18, 4294967040  ;;  %s26_s11 = sadd.s32 1, %s1718_s11   ;;  %s2325_s12 = sld [smem:[#allocation14_spill]] }
 0x3fc   : > { %p23_p3 = scmp.ge.s32.totalorder %s26_s11, 6   ;;  %s2326_s26 = sld [smem:[#allocation20_spill]] }
 0x3fd   : > { %s2327_s8 = sld [smem:[#allocation15_spill]]  ;;  %s2328_s29 = sld [smem:[#allocation19_spill]] }
 0x3fe   : > { %s2329_s14 = sld [smem:[#allocation16_spill]]  ;;  %s2330_s20 = sld [smem:[#allocation17_spill]] }
 0x3ff   : > { %s2331_s10 = sld [smem:[#allocation18_spill]]  ;;  %s2332_s24 = smov %s1682_s25 }
 0x400   : > { %s2334_s27 = smov %s1694_s28  ;;  %s2336_s30 = smov %s1710_s9 }
 0x401   : > { %s2333_s25 = smov %s2325_s12  ;;  %25 = sbr.rel (!%p23_p3) target bundleno = 13 (0xd), region = 128 }
 0x403   : > { %s2335_s28 = smov %s2327_s8 }
 0x404   : > { %s2337_s8 = smov %s2329_s14  ;;  %s2338_s9 = smov %s2330_s20 }
 0x408   :  { %1031 = vsyncpa [#allocation5], 1 }
 0x409   :  { %1033 = vsyncpa [#allocation5 + $0x1], 1 }
 0x40a   :  { %1034 = vsyncpa [#allocation8], 1 }
 0x40b   :  { %1036 = vsyncpa [#allocation8 + $0x1], 1 }
 0x40c   :  { %1037 = vsyncpa [#allocation6], 1 }
 0x40d   :  { %1039 = vsyncpa [#allocation6 + $0x1], 1 }

</bundles_post_ra>
